<compile_context>
chip_gen: v7x
topology: tpu7x:2x2x1
jax: 0.10.0
libtpu: 0.0.40
codegen_flags: <defaults>
</compile_context>

<pallas_src>
import jax
import jax.numpy as jnp
import numpy as np
from jax.experimental import pallas as pl
from jax.experimental.pallas import tpu as pltpu

H = 16
W = 16
C_IN = 3                      # RGB input (and decoder output channels)
C_ENC = 64                    # 16 hypercolumn channels x 4 (einops repeat=4)
KS = 3                        # 3x3 convs, padding=1, stride=1
PH2, PW2 = H + 4, W + 4       # pad-2 grid (20 x 20)
LPI = PH2 * PW2               # lanes per image (400)
# flattened-lane offset of conv tap (dh, dw) relative to the output pixel
TAP_OFFSETS = tuple((dh - 1) * PW2 + (dw - 1) for dh in range(KS) for dw in range(KS))

GROUPS = [[0, 1, 4, 8, 9, 15], [2, 3], [5, 12], [10], [6, 7], [11, 13, 14]]
NORM_MEAN = np.array([0.50705882, 0.48666667, 0.44078431], np.float32)
NORM_STD = np.array([0.26745098, 0.25568627, 0.27607843], np.float32)


def _shift_lanes(x, d):
    """out[:, L] = x[:, (L + d) mod N].  The cyclic wrap only lands on lanes that the
    interior mask / host-side crop discard, so this is exact for all used lanes."""
    n = x.shape[-1]
    d = d % n
    if d == 0:
        return x
    return jnp.concatenate([x[:, d:], x[:, :d]], axis=-1)


def hypercolumn_kernel(x_ref, mask_ref, w1_ref, b1_ref, w2_ref, b2_ref, o_ref):
    """One grid step == BLOCK_B images, everything lane-dense (N = BLOCK_B*400 lanes).

    x_ref   : (3,  N)   normalized, pad-2, grid-flattened NCHW input
    mask_ref: (1,  N)   1.0 on each image's 16x16 interior, 0.0 on the pad ring
    w1_ref  : (64, 27)  encoder weights (hypercolumn mask folded in), cols=(dh,dw,ci)
    b1_ref  : (64, 1)   encoder bias * r
    w2_ref  : (9, 3, 64) decoder weights per tap, [t, c_out, c_in]
    b2_ref  : (3, 1)    decoder bias
    o_ref   : (3,  N)   decoder output on the pad-2 grid (host crops to 16x16)
    """
    x = x_ref[...]                                                    # (3, N)

    # ---- encoder conv (3 -> 64): 9 lane shifts of the tiny 3-row input, stacked into
    #      a 27-row im2col operand, then ONE MXU matmul (M=64, K=27, N lanes) ----
    p1 = jnp.stack([_shift_lanes(x, d) for d in TAP_OFFSETS], axis=0)  # (9, 3, N)
    p1 = p1.reshape(KS * KS * C_IN, x.shape[-1])                       # (27, N)
    enc = jnp.dot(w1_ref[...], p1,
                  preferred_element_type=jnp.float32) + b1_ref[...]   # (64, N)

    # ---- zero everything outside the 16x16 interior: exactly reproduces the
    #      decoder's padding=1 zeros and kills shift-wrap-contaminated lanes ----
    enc = enc * mask_ref[...]

    # ---- decoder conv (64 -> 3), kn2row: per tap one tiny (3,64)@(64,N) matmul,
    #      lane-shift its 3-row result and accumulate (no (rows,576) buffer) ----
    w2 = w2_ref[...]                                                   # (9, 3, 64)
    dec = b2_ref[...]                                                  # (3, 1) -> bcast
    for t in range(KS * KS):
        proj_t = jnp.dot(w2[t], enc, preferred_element_type=jnp.float32)   # (3, N)
        dec = dec + _shift_lanes(proj_t, TAP_OFFSETS[t])
    o_ref[...] = dec.astype(o_ref.dtype)                               # lane-dense store


def make_group_mask(cond=(0,)):
    """r: zeros(16) with selected groups set to 1, repeated x4 -> 64 channels."""
    r16 = np.zeros(16, np.float32)
    for i in cond:
        for j in GROUPS[i]:
            r16[j] = 1.0
    # einops: 'n c h w -> n (c repeat) h w', repeat=4 == contiguous repeat
    return np.repeat(r16, 4).astype(np.float32)                        # (64,)


def _pick_block_b(n, max_b=32):
    """Images per grid step.  For small n take the whole batch (block == full array,
    no lane-alignment constraint).  Otherwise use a multiple-of-8 block so the lane
    block (bb*400) stays 128-aligned, and the grid has >= 2 steps so both v7x
    TensorCores get work (dimension_semantics='parallel')."""
    if n <= max_b:
        return max(n, 1)
    return max_b


def hypercolumn_lgn(x_nchw, params, cond=(0,), max_block_b=32):
    w1, b1, w2, b2 = params      # HWIO: (3,3,3,64) / (64,) / (3,3,64,3) / (3,)
    n = x_nchw.shape[0]

    # --- host-side algebraic folding (exact): hypercolumn mask into encoder params ---
    r = jnp.asarray(make_group_mask(cond))                             # (64,)
    w1_all = jnp.transpose(w1 * r.reshape(1, 1, 1, C_ENC),
                           (3, 0, 1, 2)).reshape(C_ENC, KS * KS * C_IN)  # (64, 27)
    b1_all = (b1 * r).reshape(C_ENC, 1)                                # (64, 1)
    w2_all = jnp.transpose(w2, (0, 1, 3, 2)).reshape(KS * KS, C_IN, C_ENC)  # (9, 3, 64)
    b2_all = b2.reshape(C_IN, 1)                                       # (3, 1)

    # --- host-side normalization + pad-2 + flatten to lane-dense (3, n*400) ---
    mean = jnp.asarray(NORM_MEAN).reshape(1, C_IN, 1, 1)
    stdinv = jnp.asarray(1.0 / NORM_STD).reshape(1, C_IN, 1, 1)
    xn = (x_nchw.astype(jnp.float32) - mean) * stdinv                  # (n, 3, 16, 16)
    x_pad = jnp.pad(xn, ((0, 0), (0, 0), (2, 2), (2, 2)))              # (n, 3, 20, 20)

    bb = _pick_block_b(n, max_block_b)
    n_pad = pl.cdiv(n, bb) * bb
    if n_pad != n:
        x_pad = jnp.pad(x_pad, ((0, n_pad - n), (0, 0), (0, 0), (0, 0)))
    x_flat = jnp.transpose(x_pad, (1, 0, 2, 3)).reshape(C_IN, n_pad * LPI)  # (3, n*400)

    # interior mask (1 on the 16x16 image, 0 on the 2-wide pad ring), tiled per image
    m2d = np.zeros((PH2, PW2), np.float32)
    m2d[2:2 + H, 2:2 + W] = 1.0
    mask = jnp.tile(jnp.asarray(m2d.reshape(1, LPI)), (1, n_pad))      # (1, n*400)

    nl = bb * LPI
    out_flat = pl.pallas_call(
        hypercolumn_kernel,
        out_shape=jax.ShapeDtypeStruct((C_IN, n_pad * LPI), jnp.float32),
        grid_spec=pltpu.PrefetchScalarGridSpec(
            num_scalar_prefetch=0,
            grid=(n_pad // bb,),
            in_specs=[
                pl.BlockSpec((C_IN, nl), lambda b: (0, b)),                 # x, lane-dense
                pl.BlockSpec((1, nl), lambda b: (0, b)),                    # interior mask
                pl.BlockSpec((C_ENC, KS * KS * C_IN), lambda b: (0, 0)),    # w1 (64,27)
                pl.BlockSpec((C_ENC, 1), lambda b: (0, 0)),                 # b1
                pl.BlockSpec((KS * KS, C_IN, C_ENC), lambda b: (0, 0, 0)),  # w2 (9,3,64)
                pl.BlockSpec((C_IN, 1), lambda b: (0, 0)),                  # b2
            ],
            out_specs=pl.BlockSpec((C_IN, nl), lambda b: (0, b)),           # lane-dense
        ),
        compiler_params=pltpu.CompilerParams(
            dimension_semantics=("parallel",),
            vmem_limit_bytes=32 * 1024 * 1024),
    )(x_flat, mask, w1_all, b1_all, w2_all, b2_all)

    # host-side crop of the pad-2 grid back to 16x16 (pure layout plumbing)
    out = out_flat.reshape(C_IN, n_pad, PH2, PW2)[:, :n, 2:2 + H, 2:2 + W]
    return jnp.transpose(out, (1, 0, 2, 3))                            # (n, 3, 16, 16)


def reference(x_nchw, params, cond=(0,)):
    """Pure-JAX reference (lax.conv) of the original un-fused pipeline."""
    w1, b1, w2, b2 = params
    r = jnp.asarray(make_group_mask(cond)).reshape(1, C_ENC, 1, 1)
    xn = (x_nchw - NORM_MEAN.reshape(1, C_IN, 1, 1)) / NORM_STD.reshape(1, C_IN, 1, 1)
    enc = jax.lax.conv_general_dilated(
        xn, w1, (1, 1), 'SAME', dimension_numbers=('NCHW', 'HWIO', 'NCHW')
    ) + b1.reshape(1, C_ENC, 1, 1)
    enc = enc * r
    dec = jax.lax.conv_general_dilated(
        enc, w2, (1, 1), 'SAME', dimension_numbers=('NCHW', 'HWIO', 'NCHW')
    ) + b2.reshape(1, C_IN, 1, 1)
    return dec


if __name__ == "__main__":
    key = jax.random.PRNGKey(0)
    k1, k2, k3, k4, kx = jax.random.split(key, 5)

    # deterministic synthetic lgn_ende weights (HWIO layout)
    w1 = 0.1 * jax.random.normal(k1, (KS, KS, C_IN, C_ENC), jnp.float32)
    b1 = 0.01 * jax.random.normal(k2, (C_ENC,), jnp.float32)
    w2 = 0.1 * jax.random.normal(k3, (KS, KS, C_ENC, C_IN), jnp.float32)
    b2 = 0.01 * jax.random.normal(k4, (C_IN,), jnp.float32)
    params = (w1, b1, w2, b2)

    # image-like input in [0, 1], NCHW like the PyTorch module expects
    x = jax.random.uniform(kx, (2, C_IN, H, W), jnp.float32)
    out = jax.block_until_ready(hypercolumn_lgn(x, params, cond=(0,)))
    ref = reference(x, params, cond=(0,))
    # tolerance: XLA's conv and the Mosaic MXU path may use different default f32
    # matmul precision policies (bf16 passes); any layout/indexing bug would produce
    # errors orders of magnitude larger than this.
    np.testing.assert_allclose(np.asarray(out), np.asarray(ref), atol=1e-2, rtol=1e-2)

    # exercise the multi-block path (grid > 1, batch padding, BLOCK_B = 32)
    xb = jax.random.uniform(jax.random.PRNGKey(1), (40, C_IN, H, W), jnp.float32)
    outb = jax.block_until_ready(hypercolumn_lgn(xb, params, cond=(0,)))
    refb = reference(xb, params, cond=(0,))
    np.testing.assert_allclose(np.asarray(outb), np.asarray(refb), atol=1e-2, rtol=1e-2)

    print("KERNEL_OK")
</pallas_src>

<mosaic_0001>
module attributes {stable_mosaic.version = 11 : i64} {
  func.func @hypercolumn_kernel(%arg0: i32, %arg1: memref<3x800xf32, #tpu.memory_space<vmem>>, %arg2: memref<1x800xf32, #tpu.memory_space<vmem>>, %arg3: memref<64x27xf32, #tpu.memory_space<vmem>>, %arg4: memref<64x1xf32, #tpu.memory_space<vmem>>, %arg5: memref<9x3x64xf32, #tpu.memory_space<vmem>>, %arg6: memref<3x1xf32, #tpu.memory_space<vmem>>, %arg7: memref<3x800xf32, #tpu.memory_space<vmem>>) attributes {dimension_semantics = [#tpu.dimension_semantics<parallel>], iteration_bounds = array<i64: 1>, scalar_prefetch = 0 : i64, scratch_operands = 0 : i64, tpu.core_type = #tpu.core_type<tc>, window_params = [{transform_indices = @transform_0, window_bounds = array<i64: 3, 800>}, {transform_indices = @transform_1, window_bounds = array<i64: 1, 800>}, {pipeline_mode = #tpu.pipeline_mode<synchronous>, transform_indices = @transform_2, window_bounds = array<i64: 64, 27>}, {pipeline_mode = #tpu.pipeline_mode<synchronous>, transform_indices = @transform_3, window_bounds = array<i64: 64, 1>}, {pipeline_mode = #tpu.pipeline_mode<synchronous>, transform_indices = @transform_4, window_bounds = array<i64: 9, 3, 64>}, {pipeline_mode = #tpu.pipeline_mode<synchronous>, transform_indices = @transform_5, window_bounds = array<i64: 3, 1>}, {transform_indices = @transform_6, window_bounds = array<i64: 3, 800>}]} {
    %c0 = arith.constant 0 : index
    %c0_0 = arith.constant 0 : index
    %0 = vector.load %arg1[%c0, %c0_0] : memref<3x800xf32, #tpu.memory_space<vmem>>, vector<3x800xf32>
    %1 = vector.extract_strided_slice %0 {offsets = [0, 779], sizes = [3, 21], strides = [1, 1]} : vector<3x800xf32> to vector<3x21xf32>
    %2 = vector.extract_strided_slice %0 {offsets = [0, 0], sizes = [3, 779], strides = [1, 1]} : vector<3x800xf32> to vector<3x779xf32>
    %3 = tpu.concatenate %1, %2 in 1 : vector<3x21xf32>, vector<3x779xf32> -> vector<3x800xf32>
    %4 = vector.extract_strided_slice %0 {offsets = [0, 780], sizes = [3, 20], strides = [1, 1]} : vector<3x800xf32> to vector<3x20xf32>
    %5 = vector.extract_strided_slice %0 {offsets = [0, 0], sizes = [3, 780], strides = [1, 1]} : vector<3x800xf32> to vector<3x780xf32>
    %6 = tpu.concatenate %4, %5 in 1 : vector<3x20xf32>, vector<3x780xf32> -> vector<3x800xf32>
    %7 = vector.extract_strided_slice %0 {offsets = [0, 781], sizes = [3, 19], strides = [1, 1]} : vector<3x800xf32> to vector<3x19xf32>
    %8 = vector.extract_strided_slice %0 {offsets = [0, 0], sizes = [3, 781], strides = [1, 1]} : vector<3x800xf32> to vector<3x781xf32>
    %9 = tpu.concatenate %7, %8 in 1 : vector<3x19xf32>, vector<3x781xf32> -> vector<3x800xf32>
    %10 = vector.extract_strided_slice %0 {offsets = [0, 799], sizes = [3, 1], strides = [1, 1]} : vector<3x800xf32> to vector<3x1xf32>
    %11 = vector.extract_strided_slice %0 {offsets = [0, 0], sizes = [3, 799], strides = [1, 1]} : vector<3x800xf32> to vector<3x799xf32>
    %12 = tpu.concatenate %10, %11 in 1 : vector<3x1xf32>, vector<3x799xf32> -> vector<3x800xf32>
    %13 = vector.extract_strided_slice %0 {offsets = [0, 1], sizes = [3, 799], strides = [1, 1]} : vector<3x800xf32> to vector<3x799xf32>
    %14 = vector.extract_strided_slice %0 {offsets = [0, 0], sizes = [3, 1], strides = [1, 1]} : vector<3x800xf32> to vector<3x1xf32>
    %15 = tpu.concatenate %13, %14 in 1 : vector<3x799xf32>, vector<3x1xf32> -> vector<3x800xf32>
    %16 = vector.extract_strided_slice %0 {offsets = [0, 19], sizes = [3, 781], strides = [1, 1]} : vector<3x800xf32> to vector<3x781xf32>
    %17 = vector.extract_strided_slice %0 {offsets = [0, 0], sizes = [3, 19], strides = [1, 1]} : vector<3x800xf32> to vector<3x19xf32>
    %18 = tpu.concatenate %16, %17 in 1 : vector<3x781xf32>, vector<3x19xf32> -> vector<3x800xf32>
    %19 = vector.extract_strided_slice %0 {offsets = [0, 20], sizes = [3, 780], strides = [1, 1]} : vector<3x800xf32> to vector<3x780xf32>
    %20 = vector.extract_strided_slice %0 {offsets = [0, 0], sizes = [3, 20], strides = [1, 1]} : vector<3x800xf32> to vector<3x20xf32>
    %21 = tpu.concatenate %19, %20 in 1 : vector<3x780xf32>, vector<3x20xf32> -> vector<3x800xf32>
    %22 = vector.extract_strided_slice %0 {offsets = [0, 21], sizes = [3, 779], strides = [1, 1]} : vector<3x800xf32> to vector<3x779xf32>
    %23 = vector.extract_strided_slice %0 {offsets = [0, 0], sizes = [3, 21], strides = [1, 1]} : vector<3x800xf32> to vector<3x21xf32>
    %24 = tpu.concatenate %22, %23 in 1 : vector<3x779xf32>, vector<3x21xf32> -> vector<3x800xf32>
    %25 = vector.shape_cast %3 : vector<3x800xf32> to vector<1x3x800xf32>
    %26 = vector.shape_cast %6 : vector<3x800xf32> to vector<1x3x800xf32>
    %27 = vector.shape_cast %9 : vector<3x800xf32> to vector<1x3x800xf32>
    %28 = vector.shape_cast %12 : vector<3x800xf32> to vector<1x3x800xf32>
    %29 = vector.shape_cast %0 : vector<3x800xf32> to vector<1x3x800xf32>
    %30 = vector.shape_cast %15 : vector<3x800xf32> to vector<1x3x800xf32>
    %31 = vector.shape_cast %18 : vector<3x800xf32> to vector<1x3x800xf32>
    %32 = vector.shape_cast %21 : vector<3x800xf32> to vector<1x3x800xf32>
    %33 = vector.shape_cast %24 : vector<3x800xf32> to vector<1x3x800xf32>
    %34 = tpu.concatenate %25, %26, %27, %28, %29, %30, %31, %32, %33 in 0 : vector<1x3x800xf32>, vector<1x3x800xf32>, vector<1x3x800xf32>, vector<1x3x800xf32>, vector<1x3x800xf32>, vector<1x3x800xf32>, vector<1x3x800xf32>, vector<1x3x800xf32>, vector<1x3x800xf32> -> vector<9x3x800xf32>
    %35 = vector.shape_cast %34 : vector<9x3x800xf32> to vector<27x800xf32>
    %c0_1 = arith.constant 0 : index
    %c0_2 = arith.constant 0 : index
    %36 = vector.load %arg3[%c0_1, %c0_2] : memref<64x27xf32, #tpu.memory_space<vmem>>, vector<64x27xf32>
    %cst = arith.constant dense<0.000000e+00> : vector<64x800xf32>
    %37 = tpu.matmul %36, %35, %cst {dimension_numbers = #tpu.dot_dimension_numbers<[1], [0], [0], [1], [0, 0, 1, 1], [], []>} : vector<64x27xf32>, vector<27x800xf32>, vector<64x800xf32> -> vector<64x800xf32>
    %c0_3 = arith.constant 0 : index
    %c0_4 = arith.constant 0 : index
    %38 = vector.load %arg4[%c0_3, %c0_4] : memref<64x1xf32, #tpu.memory_space<vmem>>, vector<64x1xf32>
    %39 = vector.broadcast %38 : vector<64x1xf32> to vector<64x800xf32>
    %40 = arith.addf %37, %39 : vector<64x800xf32>
    %c0_5 = arith.constant 0 : index
    %c0_6 = arith.constant 0 : index
    %41 = vector.load %arg2[%c0_5, %c0_6] : memref<1x800xf32, #tpu.memory_space<vmem>>, vector<1x800xf32>
    %42 = vector.broadcast %41 : vector<1x800xf32> to vector<64x800xf32>
    %43 = arith.mulf %40, %42 : vector<64x800xf32>
    %c0_7 = arith.constant 0 : index
    %c0_8 = arith.constant 0 : index
    %c0_9 = arith.constant 0 : index
    %44 = vector.load %arg5[%c0_7, %c0_8, %c0_9] : memref<9x3x64xf32, #tpu.memory_space<vmem>>, vector<9x3x64xf32>
    %c0_10 = arith.constant 0 : index
    %c0_11 = arith.constant 0 : index
    %45 = vector.load %arg6[%c0_10, %c0_11] : memref<3x1xf32, #tpu.memory_space<vmem>>, vector<3x1xf32>
    %46 = vector.extract_strided_slice %44 {offsets = [0, 0, 0], sizes = [1, 3, 64], strides = [1, 1, 1]} : vector<9x3x64xf32> to vector<1x3x64xf32>
    %47 = vector.shape_cast %46 : vector<1x3x64xf32> to vector<3x64xf32>
    %cst_12 = arith.constant dense<0.000000e+00> : vector<3x800xf32>
    %48 = tpu.matmul %47, %43, %cst_12 {dimension_numbers = #tpu.dot_dimension_numbers<[1], [0], [0], [1], [0, 0, 1, 1], [], []>} : vector<3x64xf32>, vector<64x800xf32>, vector<3x800xf32> -> vector<3x800xf32>
    %49 = vector.extract_strided_slice %48 {offsets = [0, 779], sizes = [3, 21], strides = [1, 1]} : vector<3x800xf32> to vector<3x21xf32>
    %50 = vector.extract_strided_slice %48 {offsets = [0, 0], sizes = [3, 779], strides = [1, 1]} : vector<3x800xf32> to vector<3x779xf32>
    %51 = tpu.concatenate %49, %50 in 1 : vector<3x21xf32>, vector<3x779xf32> -> vector<3x800xf32>
    %52 = vector.broadcast %45 : vector<3x1xf32> to vector<3x800xf32>
    %53 = arith.addf %52, %51 : vector<3x800xf32>
    %54 = vector.extract_strided_slice %44 {offsets = [1, 0, 0], sizes = [1, 3, 64], strides = [1, 1, 1]} : vector<9x3x64xf32> to vector<1x3x64xf32>
    %55 = vector.shape_cast %54 : vector<1x3x64xf32> to vector<3x64xf32>
    %cst_13 = arith.constant dense<0.000000e+00> : vector<3x800xf32>
    %56 = tpu.matmul %55, %43, %cst_13 {dimension_numbers = #tpu.dot_dimension_numbers<[1], [0], [0], [1], [0, 0, 1, 1], [], []>} : vector<3x64xf32>, vector<64x800xf32>, vector<3x800xf32> -> vector<3x800xf32>
    %57 = vector.extract_strided_slice %56 {offsets = [0, 780], sizes = [3, 20], strides = [1, 1]} : vector<3x800xf32> to vector<3x20xf32>
    %58 = vector.extract_strided_slice %56 {offsets = [0, 0], sizes = [3, 780], strides = [1, 1]} : vector<3x800xf32> to vector<3x780xf32>
    %59 = tpu.concatenate %57, %58 in 1 : vector<3x20xf32>, vector<3x780xf32> -> vector<3x800xf32>
    %60 = arith.addf %53, %59 : vector<3x800xf32>
    %61 = vector.extract_strided_slice %44 {offsets = [2, 0, 0], sizes = [1, 3, 64], strides = [1, 1, 1]} : vector<9x3x64xf32> to vector<1x3x64xf32>
    %62 = vector.shape_cast %61 : vector<1x3x64xf32> to vector<3x64xf32>
    %cst_14 = arith.constant dense<0.000000e+00> : vector<3x800xf32>
    %63 = tpu.matmul %62, %43, %cst_14 {dimension_numbers = #tpu.dot_dimension_numbers<[1], [0], [0], [1], [0, 0, 1, 1], [], []>} : vector<3x64xf32>, vector<64x800xf32>, vector<3x800xf32> -> vector<3x800xf32>
    %64 = vector.extract_strided_slice %63 {offsets = [0, 781], sizes = [3, 19], strides = [1, 1]} : vector<3x800xf32> to vector<3x19xf32>
    %65 = vector.extract_strided_slice %63 {offsets = [0, 0], sizes = [3, 781], strides = [1, 1]} : vector<3x800xf32> to vector<3x781xf32>
    %66 = tpu.concatenate %64, %65 in 1 : vector<3x19xf32>, vector<3x781xf32> -> vector<3x800xf32>
    %67 = arith.addf %60, %66 : vector<3x800xf32>
    %68 = vector.extract_strided_slice %44 {offsets = [3, 0, 0], sizes = [1, 3, 64], strides = [1, 1, 1]} : vector<9x3x64xf32> to vector<1x3x64xf32>
    %69 = vector.shape_cast %68 : vector<1x3x64xf32> to vector<3x64xf32>
    %cst_15 = arith.constant dense<0.000000e+00> : vector<3x800xf32>
    %70 = tpu.matmul %69, %43, %cst_15 {dimension_numbers = #tpu.dot_dimension_numbers<[1], [0], [0], [1], [0, 0, 1, 1], [], []>} : vector<3x64xf32>, vector<64x800xf32>, vector<3x800xf32> -> vector<3x800xf32>
    %71 = vector.extract_strided_slice %70 {offsets = [0, 799], sizes = [3, 1], strides = [1, 1]} : vector<3x800xf32> to vector<3x1xf32>
    %72 = vector.extract_strided_slice %70 {offsets = [0, 0], sizes = [3, 799], strides = [1, 1]} : vector<3x800xf32> to vector<3x799xf32>
    %73 = tpu.concatenate %71, %72 in 1 : vector<3x1xf32>, vector<3x799xf32> -> vector<3x800xf32>
    %74 = arith.addf %67, %73 : vector<3x800xf32>
    %75 = vector.extract_strided_slice %44 {offsets = [4, 0, 0], sizes = [1, 3, 64], strides = [1, 1, 1]} : vector<9x3x64xf32> to vector<1x3x64xf32>
    %76 = vector.shape_cast %75 : vector<1x3x64xf32> to vector<3x64xf32>
    %cst_16 = arith.constant dense<0.000000e+00> : vector<3x800xf32>
    %77 = tpu.matmul %76, %43, %cst_16 {dimension_numbers = #tpu.dot_dimension_numbers<[1], [0], [0], [1], [0, 0, 1, 1], [], []>} : vector<3x64xf32>, vector<64x800xf32>, vector<3x800xf32> -> vector<3x800xf32>
    %78 = arith.addf %74, %77 : vector<3x800xf32>
    %79 = vector.extract_strided_slice %44 {offsets = [5, 0, 0], sizes = [1, 3, 64], strides = [1, 1, 1]} : vector<9x3x64xf32> to vector<1x3x64xf32>
    %80 = vector.shape_cast %79 : vector<1x3x64xf32> to vector<3x64xf32>
    %cst_17 = arith.constant dense<0.000000e+00> : vector<3x800xf32>
    %81 = tpu.matmul %80, %43, %cst_17 {dimension_numbers = #tpu.dot_dimension_numbers<[1], [0], [0], [1], [0, 0, 1, 1], [], []>} : vector<3x64xf32>, vector<64x800xf32>, vector<3x800xf32> -> vector<3x800xf32>
    %82 = vector.extract_strided_slice %81 {offsets = [0, 1], sizes = [3, 799], strides = [1, 1]} : vector<3x800xf32> to vector<3x799xf32>
    %83 = vector.extract_strided_slice %81 {offsets = [0, 0], sizes = [3, 1], strides = [1, 1]} : vector<3x800xf32> to vector<3x1xf32>
    %84 = tpu.concatenate %82, %83 in 1 : vector<3x799xf32>, vector<3x1xf32> -> vector<3x800xf32>
    %85 = arith.addf %78, %84 : vector<3x800xf32>
    %86 = vector.extract_strided_slice %44 {offsets = [6, 0, 0], sizes = [1, 3, 64], strides = [1, 1, 1]} : vector<9x3x64xf32> to vector<1x3x64xf32>
    %87 = vector.shape_cast %86 : vector<1x3x64xf32> to vector<3x64xf32>
    %cst_18 = arith.constant dense<0.000000e+00> : vector<3x800xf32>
    %88 = tpu.matmul %87, %43, %cst_18 {dimension_numbers = #tpu.dot_dimension_numbers<[1], [0], [0], [1], [0, 0, 1, 1], [], []>} : vector<3x64xf32>, vector<64x800xf32>, vector<3x800xf32> -> vector<3x800xf32>
    %89 = vector.extract_strided_slice %88 {offsets = [0, 19], sizes = [3, 781], strides = [1, 1]} : vector<3x800xf32> to vector<3x781xf32>
    %90 = vector.extract_strided_slice %88 {offsets = [0, 0], sizes = [3, 19], strides = [1, 1]} : vector<3x800xf32> to vector<3x19xf32>
    %91 = tpu.concatenate %89, %90 in 1 : vector<3x781xf32>, vector<3x19xf32> -> vector<3x800xf32>
    %92 = arith.addf %85, %91 : vector<3x800xf32>
    %93 = vector.extract_strided_slice %44 {offsets = [7, 0, 0], sizes = [1, 3, 64], strides = [1, 1, 1]} : vector<9x3x64xf32> to vector<1x3x64xf32>
    %94 = vector.shape_cast %93 : vector<1x3x64xf32> to vector<3x64xf32>
    %cst_19 = arith.constant dense<0.000000e+00> : vector<3x800xf32>
    %95 = tpu.matmul %94, %43, %cst_19 {dimension_numbers = #tpu.dot_dimension_numbers<[1], [0], [0], [1], [0, 0, 1, 1], [], []>} : vector<3x64xf32>, vector<64x800xf32>, vector<3x800xf32> -> vector<3x800xf32>
    %96 = vector.extract_strided_slice %95 {offsets = [0, 20], sizes = [3, 780], strides = [1, 1]} : vector<3x800xf32> to vector<3x780xf32>
    %97 = vector.extract_strided_slice %95 {offsets = [0, 0], sizes = [3, 20], strides = [1, 1]} : vector<3x800xf32> to vector<3x20xf32>
    %98 = tpu.concatenate %96, %97 in 1 : vector<3x780xf32>, vector<3x20xf32> -> vector<3x800xf32>
    %99 = arith.addf %92, %98 : vector<3x800xf32>
    %100 = vector.extract_strided_slice %44 {offsets = [8, 0, 0], sizes = [1, 3, 64], strides = [1, 1, 1]} : vector<9x3x64xf32> to vector<1x3x64xf32>
    %101 = vector.shape_cast %100 : vector<1x3x64xf32> to vector<3x64xf32>
    %cst_20 = arith.constant dense<0.000000e+00> : vector<3x800xf32>
    %102 = tpu.matmul %101, %43, %cst_20 {dimension_numbers = #tpu.dot_dimension_numbers<[1], [0], [0], [1], [0, 0, 1, 1], [], []>} : vector<3x64xf32>, vector<64x800xf32>, vector<3x800xf32> -> vector<3x800xf32>
    %103 = vector.extract_strided_slice %102 {offsets = [0, 21], sizes = [3, 779], strides = [1, 1]} : vector<3x800xf32> to vector<3x779xf32>
    %104 = vector.extract_strided_slice %102 {offsets = [0, 0], sizes = [3, 21], strides = [1, 1]} : vector<3x800xf32> to vector<3x21xf32>
    %105 = tpu.concatenate %103, %104 in 1 : vector<3x779xf32>, vector<3x21xf32> -> vector<3x800xf32>
    %106 = arith.addf %99, %105 : vector<3x800xf32>
    %c0_21 = arith.constant 0 : index
    %c0_22 = arith.constant 0 : index
    %107 = vector.load %arg7[%c0_21, %c0_22] : memref<3x800xf32, #tpu.memory_space<vmem>>, vector<3x800xf32>
    tpu.vector_store %arg7[%c0_21, %c0_22], %106 {strides = array<i32>} : memref<3x800xf32, #tpu.memory_space<vmem>>, vector<3x800xf32>,
    return
  }
  func.func @transform_0(%arg0: i32) -> (i32, i32) {
    %c0_i32 = arith.constant 0 : i32
    %c0_i32_0 = arith.constant 0 : i32
    return %c0_i32, %arg0 : i32, i32
  }
  func.func @transform_1(%arg0: i32) -> (i32, i32) {
    %c0_i32 = arith.constant 0 : i32
    %c0_i32_0 = arith.constant 0 : i32
    return %c0_i32, %arg0 : i32, i32
  }
  func.func @transform_2(%arg0: i32) -> (i32, i32) {
    %c0_i32 = arith.constant 0 : i32
    %c0_i32_0 = arith.constant 0 : i32
    %c0_i32_1 = arith.constant 0 : i32
    return %c0_i32, %c0_i32_0 : i32, i32
  }
  func.func @transform_3(%arg0: i32) -> (i32, i32) {
    %c0_i32 = arith.constant 0 : i32
    %c0_i32_0 = arith.constant 0 : i32
    %c0_i32_1 = arith.constant 0 : i32
    return %c0_i32, %c0_i32_0 : i32, i32
  }
  func.func @transform_4(%arg0: i32) -> (i32, i32, i32) {
    %c0_i32 = arith.constant 0 : i32
    %c0_i32_0 = arith.constant 0 : i32
    %c0_i32_1 = arith.constant 0 : i32
    %c0_i32_2 = arith.constant 0 : i32
    return %c0_i32, %c0_i32_0, %c0_i32_1 : i32, i32, i32
  }
  func.func @transform_5(%arg0: i32) -> (i32, i32) {
    %c0_i32 = arith.constant 0 : i32
    %c0_i32_0 = arith.constant 0 : i32
    %c0_i32_1 = arith.constant 0 : i32
    return %c0_i32, %c0_i32_0 : i32, i32
  }
  func.func @transform_6(%arg0: i32) -> (i32, i32) {
    %c0_i32 = arith.constant 0 : i32
    %c0_i32_0 = arith.constant 0 : i32
    return %c0_i32, %arg0 : i32, i32
  }
}

</mosaic_0001>

<bundles_post_ra>
// kernel: tpu_custom_call.1
= control target key start
LH: loop header
LB: loop body
LE: loop exit
PB: predicated region body
PF: predicated region fallthrough
CT: control target
= control target key end

     0   :  { %s5984_s25 = smov 117   ;;  %s5985_s28 = smov 21   ;;  %s7633_s0 = inlined_call_operand.vmem [shape: f32[3,800], index: 0, kind: input, shape index: {}]   ;;  %s7634_s1 = inlined_call_operand.vmem [shape: f32[1,800], index: 1, kind: input, shape index: {}]   ;;  %s7635_s2 = inlined_call_operand.vmem [shape: f32[64,27], index: 2, kind: input, shape index: {}]   ;;  %s7636_s3 = inlined_call_operand.vmem [shape: f32[64,1], index: 3, kind: input, shape index: {}]   ;;  %s7637_s4 = inlined_call_operand.vmem [shape: f32[9,3,64], index: 4, kind: input, shape index: {}]   ;;  %s7638_s5 = inlined_call_operand.vmem [shape: f32[3,1], index: 5, kind: input, shape index: {}]   ;;  %s7639_s6 = inlined_call_operand.hbm [shape: f32[3,800], index: 6, kind: output, shape index: {}]  }
   0x1   :  { %v6045_v0 = vld [vmem:[%s7633_s0 + $0x18] sm:$0x7]  ;;  %v6050_v1 = vld [vmem:[%s7633_s0] sm:$0x77]  ;;  %v6061_v3 = vld [vmem:[%s7633_s0 + $0x8] sm:$0x77] }
   0x2   :  { %29 = vrot.lane.b32.xlu0 %v6045_v0, %s5984_s25  ;;  %v6056_v2 = vcombine.high %v6050_v1, %v6050_v1 }
   0x4   :  { %40 = vrot.lane.b32.xlu1 %v6056_v2, %s5985_s28 }
   0x5   :  { %11 = vsyncpa [#allocation3], 0  ;;  %v6069_v4 = vcombine.high %v6061_v3, %v6061_v3  ;;  %v6074_v5 = vld [vmem:[%s7633_s0 + $0x10] sm:$0x77]  ;;  %s5986_s7 = smov 116   ;;  %s5987_s0 = smov 20   ;;  %v261_v30 = vlaneseq  ;;  %v519_v37 = vcombine.low %v6050_v1, %v6056_v2 }
   0x6   :  { %38 = vrot.lane.b32.xlu0 %v6050_v1, %s5985_s28  ;;  %v6082_v6 = vcombine.high %v6074_v5, %v6074_v5  ;;  %s5988_s8 = smov 115   ;;  %s5989_s9 = smov 19   ;;  %v6000_v17 = vmov 0.0   ;;  %v6001_v28 = vmov 1966171168   ;;  %vm52_vm0 = vcmask 171008  }
   0x7   :  { %s5990_s10 = smov 97   ;;  %s5991_s11 = smov 1   ;;  %1501 = vmatprep.mubr.f32.mxu0 %v6000_v17  ;;  %1537 = vmatprep.mubr.f32.mxu1 %v6000_v17  ;;  %v259_v29 = vunpack.c.l.s4 %v6001_v28  ;;  %v6218_v34 = vshrl.u32 %v261_v30, 7  ;;  %v520_v38 = vcombine.low %v6061_v3, %v6069_v4  ;;  %vm78_vm1 = vcmask 162816  }
   0x8   :  { %42 = vrot.lane.b32.xlu1 %v6061_v3, %s5985_s28  ;;  %s5992_s12 = smov 127   ;;  %s5993_s13 = smov 109   ;;  %v521_v45 = vcombine.low %v6074_v5, %v6082_v6  ;;  %vm104_vm2 = vcmask 154624   ;;  %vm130_vm3 = vcmask 7168   ;;  %vm153_vm4 = vcmask 1039360  }
   0x9   :  { %s5994_s14 = smov 108   ;;  %s5995_s15 = smov 31   ;;  %v260_v33 = vunpack.c.0.s8 %v259_v29  ;;  %vm180_vm5 = vcmask 891904   ;;  %vm207_vm6 = vcmask 883712   ;;  %vm164_vm7 = vcmask 252928  }
   0xa   :  { %44 = vrot.lane.b32.xlu0 %v6069_v4, %s5985_s28  ;;  %s5996_s16 = smov 13   ;;  %s5997_s17 = smov 12   ;;  %vm191_vm8 = vcmask 105472   ;;  %vm218_vm9 = vcmask 97280   ;;  %vm234_vm10 = vcmask 875520   ;;  %vm245_vm11 = vcmask 89088  }
   0xb   :  { %s5998_s18 = smov 107   ;;  %s5999_s19 = smov 11   ;;  %v6227_v40 = vsub.s32 %v260_v33, %v6218_v34  ;;  %vm1422_vm12 = vcmask 1042432   ;;  %vm6003_vm13 = vmmov 1   ;;  %vm1397_vm15 = vcmask 220160  }
   0xc   :  { %46 = vrot.lane.b32.xlu1 %v6074_v5, %s5985_s28  ;;  %vm6697_vm14 = vmpackc.low %vm1422_vm12, %vm6003_vm13  ;;  %vm1984_vm12 = vcmask 523264   ;;  %vm6005_vm13 = vmmov 0  }
   0xd   :  { %v6236_v48 = vrot.slane %v519_v37, %v6227_v40  ;;  %v6239_v49 = vrot.slane %v520_v38, %v6227_v40  ;;  %v6249_v59 = vrot.slane %v521_v45, %v6227_v40  ;;  %v6253_v60 = vrot.slane %v6045_v0, %v6227_v40 }
   0xe   :  { %48 = vrot.lane.b32.xlu0 %v6082_v6, %s5985_s28 }
  0x10   :  { %61 = vrot.lane.b32.xlu1 %v6045_v0, %s5986_s7 }
  0x12   :  { %64 = vrot.lane.b32.xlu0 %v6050_v1, %s5987_s0 }
  0x14   :  { %66 = vrot.lane.b32.xlu1 %v6056_v2, %s5987_s0 }
  0x16   :  { %68 = vrot.lane.b32.xlu0 %v6061_v3, %s5987_s0 }
  0x18   :  { %70 = vrot.lane.b32.xlu1 %v6069_v4, %s5987_s0 }
  0x1a   :  { %72 = vrot.lane.b32.xlu0 %v6074_v5, %s5987_s0 }
  0x1c   :  { %74 = vrot.lane.b32.xlu1 %v6082_v6, %s5987_s0 }
  0x1e   :  { %87 = vrot.lane.b32.xlu0 %v6045_v0, %s5988_s8 }
  0x20   :  { %90 = vrot.lane.b32.xlu1 %v6050_v1, %s5989_s9 }
  0x22   :  { %92 = vrot.lane.b32.xlu0 %v6056_v2, %s5989_s9 }
  0x24   :  { %94 = vrot.lane.b32.xlu1 %v6061_v3, %s5989_s9 }
  0x26   :  { %96 = vrot.lane.b32.xlu0 %v6069_v4, %s5989_s9 }
  0x28   :  { %98 = vrot.lane.b32.xlu1 %v6074_v5, %s5989_s9 }
  0x2a   :  { %100 = vrot.lane.b32.xlu0 %v6082_v6, %s5989_s9 }
  0x2c   :  { %113 = vrot.lane.b32.xlu1 %v6045_v0, %s5990_s10 }
  0x2e   :  { %116 = vrot.lane.b32.xlu0 %v6050_v1, %s5991_s11 }
  0x30   :  { %118 = vrot.lane.b32.xlu1 %v6056_v2, %s5991_s11 }
  0x32   :  { %120 = vrot.lane.b32.xlu0 %v6061_v3, %s5991_s11 }
  0x34   :  { %122 = vrot.lane.b32.xlu1 %v6069_v4, %s5991_s11 }
  0x36   :  { %124 = vrot.lane.b32.xlu0 %v6074_v5, %s5991_s11 }
  0x38   :  { %126 = vrot.lane.b32.xlu1 %v6082_v6, %s5991_s11 }
  0x3a   :  { %50 = vrot.lane.b32.xlu0 %v6045_v0, %s5985_s28 }
  0x3c   :  { %76 = vrot.lane.b32.xlu1 %v6045_v0, %s5987_s0 }
  0x3e   :  { %102 = vrot.lane.b32.xlu0 %v6045_v0, %s5989_s9 }
  0x40   :  { %128 = vrot.lane.b32.xlu1 %v6045_v0, %s5991_s11 }
  0x42   :  { %139 = vrot.lane.b32.xlu0 %v6050_v1, %s5992_s12 }
  0x44   :  { %141 = vrot.lane.b32.xlu1 %v6056_v2, %s5992_s12 }
  0x46   :  { %143 = vrot.lane.b32.xlu0 %v6061_v3, %s5992_s12 }
  0x48   :  { %145 = vrot.lane.b32.xlu1 %v6069_v4, %s5992_s12 }
  0x4a   :  { %147 = vrot.lane.b32.xlu0 %v6074_v5, %s5992_s12 }
  0x4c   :  { %149 = vrot.lane.b32.xlu1 %v6082_v6, %s5992_s12 }
  0x4e   :  { %151 = vrot.lane.b32.xlu0 %v6045_v0, %s5992_s12 }
  0x50   :  { %166 = vrot.lane.b32.xlu1 %v6050_v1, %s5993_s13 }
  0x52   :  { %168 = vrot.lane.b32.xlu0 %v6056_v2, %s5993_s13 }
  0x54   :  { %170 = vrot.lane.b32.xlu1 %v6061_v3, %s5993_s13 }
  0x56   :  { %172 = vrot.lane.b32.xlu0 %v6069_v4, %s5993_s13 }
  0x58   :  { %174 = vrot.lane.b32.xlu1 %v6074_v5, %s5993_s13 }
  0x5a   :  { %176 = vrot.lane.b32.xlu0 %v6082_v6, %s5993_s13 }
  0x5c   :  { %178 = vrot.lane.b32.xlu1 %v6045_v0, %s5993_s13 }
  0x5e   :  { %193 = vrot.lane.b32.xlu0 %v6050_v1, %s5994_s14 }
  0x60   :  { %195 = vrot.lane.b32.xlu1 %v6056_v2, %s5994_s14 }
  0x62   :  { %197 = vrot.lane.b32.xlu0 %v6061_v3, %s5994_s14 }
  0x64   :  { %199 = vrot.lane.b32.xlu1 %v6069_v4, %s5994_s14 }
  0x66   :  { %201 = vrot.lane.b32.xlu0 %v6074_v5, %s5994_s14 }
  0x68   :  { %203 = vrot.lane.b32.xlu1 %v6082_v6, %s5994_s14 }
  0x6a   :  { %205 = vrot.lane.b32.xlu0 %v6045_v0, %s5994_s14 }
  0x6c   :  { %161 = vrot.lane.b32.xlu1 %v6050_v1, %s5995_s15 }
  0x6e   :  { %188 = vrot.lane.b32.xlu0 %v6050_v1, %s5996_s16 }
  0x70   :  { %215 = vrot.lane.b32.xlu1 %v6050_v1, %s5997_s17 }
  0x72   :  { %220 = vrot.lane.b32.xlu0 %v6050_v1, %s5998_s18 }
  0x74   :  { %v30_v7 = vpop.permute.xlu0 %29  ;;  %222 = vrot.lane.b32.xlu1 %v6056_v2, %s5998_s18  ;;  %v550_v2 = vcombine.low %v6236_v48, %v6239_v49 }
  0x76   :  { %224 = vrot.lane.b32.xlu0 %v6061_v3, %s5998_s18  ;;  %v41_v8 = vpop.permute.xlu1 %40 }
  0x78   :  { %v39_v9 = vpop.permute.xlu0 %38  ;;  %226 = vrot.lane.b32.xlu1 %v6069_v4, %s5998_s18 }
  0x79   :  { %v53_v50 = vsel %vm52_vm0, %v39_v9, %v41_v8  ;;  %v60_v51 = vsel %vm52_vm0, %v30_v7, %v39_v9 }
  0x7a   :  { %228 = vrot.lane.b32.xlu0 %v6074_v5, %s5998_s18  ;;  %v43_v10 = vpop.permute.xlu1 %42  ;;  %v255_v61 = vcombine.low %v60_v51, %v53_v50 }
  0x7b   :  { %v54_v42 = vsel %vm52_vm0, %v41_v8, %v43_v10 }
  0x7c   :  { %v6196_v11 = vpop.permute.xlu0 %44  ;;  %230 = vrot.lane.b32.xlu1 %v6082_v6, %s5998_s18 }
  0x7d   :  { %v55_v39 = vsel %vm52_vm0, %v43_v10, %v6196_v11 }
  0x7e   :  { %232 = vrot.lane.b32.xlu0 %v6045_v0, %s5998_s18  ;;  %v47_v12 = vpop.permute.xlu1 %46  ;;  %v256_v46 = vcombine.low %v54_v42, %v55_v39 }
  0x7f   :  { %v56_v63 = vsel %vm52_vm0, %v6196_v11, %v47_v12 }
  0x80   :  { %v6202_v13 = vpop.permute.xlu0 %48  ;;  %242 = vrot.lane.b32.xlu1 %v6050_v1, %s5999_s19  ;;  %v6256_v62 = vrot.slane %v256_v46, %v6227_v40 }
  0x81   :  { %v57_v54 = vsel %vm52_vm0, %v47_v12, %v6202_v13 }
  0x82   :  { %v62_v14 = vpop.permute.xlu1 %61  ;;  %v257_v3 = vcombine.low %v56_v63, %v57_v54 }
  0x84   :  { %v65_v15 = vpop.permute.xlu0 %64  ;;  %v6295_v39 = vrot.slane %v257_v3, %v6227_v40 }
  0x85   :  { %v86_v4 = vsel %vm78_vm1, %v62_v14, %v65_v15 }
  0x86   :  { %v67_v16 = vpop.permute.xlu1 %66 }
  0x87   :  { %v79_v58 = vsel %vm78_vm1, %v65_v15, %v67_v16 }
  0x88   :  { %v69_v18 = vpop.permute.xlu0 %68  ;;  %v321_v6 = vcombine.low %v86_v4, %v79_v58 }
  0x89   :  { %v80_v52 = vsel %vm78_vm1, %v67_v16, %v69_v18 }
  0x8a   :  { %v71_v19 = vpop.permute.xlu1 %70 }
  0x8b   :  { %v81_v43 = vsel %vm78_vm1, %v69_v18, %v71_v19 }
  0x8c   :  { %v73_v20 = vpop.permute.xlu0 %72  ;;  %v322_v55 = vcombine.low %v80_v52, %v81_v43 }
  0x8d   :  { %v82_v53 = vsel %vm78_vm1, %v71_v19, %v73_v20 }
  0x8e   :  { %v6208_v21 = vpop.permute.xlu1 %74  ;;  %v6267_v7 = vrot.slane %v322_v55, %v6227_v40  ;;  %v552_v55 = vcombine.low %v6249_v59, %v6253_v60 }
  0x8f   :  { %v83_v44 = vsel %vm78_vm1, %v73_v20, %v6208_v21 }
  0x90   :  { %v6210_v22 = vpop.permute.xlu0 %87  ;;  %v323_v56 = vcombine.low %v82_v53, %v83_v44  ;;  %v264_v44 = vrot.slane %v255_v61, %v6227_v40 }
  0x92   :  { %v6212_v23 = vpop.permute.xlu1 %90  ;;  %v6270_v8 = vrot.slane %v323_v56, %v6227_v40  ;;  %v286_v52 = vcombine.low %v264_v44, %v6256_v62 }
  0x94   :  { %v93_v24 = vpop.permute.xlu0 %92 }
  0x95   :  { %v105_v16 = vsel %vm104_vm2, %v6212_v23, %v93_v24 }
  0x96   :  { %v95_v25 = vpop.permute.xlu1 %94 }
  0x97   :  { %v106_v9 = vsel %vm104_vm2, %v93_v24, %v95_v25 }
  0x98   :  { %v6214_v26 = vpop.permute.xlu0 %96 }
  0x99   :  { %v107_v5 = vsel %vm104_vm2, %v95_v25, %v6214_v26 }
  0x9a   :  { %v99_v27 = vpop.permute.xlu1 %98  ;;  %v388_v18 = vcombine.low %v106_v9, %v107_v5  ;;  %v551_v5 = vcombine.high %v6236_v48, %v6239_v49 }
  0x9b   :  { %v108_v25 = vsel %vm104_vm2, %v6214_v26, %v99_v27  ;;  %v112_v26 = vsel %vm104_vm2, %v6210_v22, %v6212_v23 }
  0x9c   :  { %v6216_v31 = vpop.permute.xlu0 %100  ;;  %v403_v46 = vrot.slane %v388_v18, %v6227_v40 }
  0x9d   :  { %v109_v11 = vsel %vm104_vm2, %v99_v27, %v6216_v31 }
  0x9e   :  { %v114_v32 = vpop.permute.xlu1 %113 }
  0xa0   :  { %v117_v35 = vpop.permute.xlu0 %116 }
  0xa1   :  { %v138_v29 = vsel %vm130_vm3, %v114_v32, %v117_v35  ;;  %v330_v32 = vrot.slane %v321_v6, %v6227_v40 }
  0xa2   :  { %v119_v36 = vpop.permute.xlu1 %118 }
  0xa3   :  { %v131_v12 = vsel %vm130_vm3, %v117_v35, %v119_v36  ;;  %v387_v35 = vcombine.low %v112_v26, %v105_v16 }
  0xa4   :  { %v121_v41 = vpop.permute.xlu0 %120 }
  0xa5   :  { %v132_v14 = vsel %vm130_vm3, %v119_v36, %v121_v41  ;;  %v453_v36 = vcombine.low %v138_v29, %v131_v12  ;;  %v396_v56 = vrot.slane %v387_v35, %v6227_v40  ;;  %v296_v12 = vrot.slane %v286_v52, %v6227_v40 }
  0xa6   :  { %v123_v47 = vpop.permute.xlu1 %122 }
  0xa7   :  { %v133_v0 = vsel %vm130_vm3, %v121_v41, %v123_v47  ;;  %v462_v50 = vrot.slane %v453_v36, %v6227_v40  ;;  %v418_v6 = vcombine.low %v396_v56, %v403_v46  ;;  %v419_v9 = vcombine.high %v396_v56, %v403_v46 }
  0xa8   :  { %v125_v57 = vpop.permute.xlu0 %124  ;;  %v454_v19 = vcombine.low %v132_v14, %v133_v0 }
  0xa9   :  { %v134_v24 = vsel %vm130_vm3, %v123_v47, %v125_v57  ;;  %v435_v29 = vrot.slane %v419_v9, %v6227_v40 }
  0xaa   :  { %v127_v1 = vpop.permute.xlu1 %126  ;;  %v469_v41 = vrot.slane %v454_v19, %v6227_v40 }
  0xab   :  { %v135_v20 = vsel %vm130_vm3, %v125_v57, %v127_v1 }
  0xac   :  { %v51_v10 = vpop.permute.xlu0 %50  ;;  %v455_v27 = vcombine.low %v134_v24, %v135_v20  ;;  %v484_v57 = vcombine.low %v462_v50, %v469_v41  ;;  %v485_v14 = vcombine.high %v462_v50, %v469_v41 }
  0xad   :  { %v58_v15 = vsel %vm52_vm0, %v6202_v13, %v51_v10  ;;  %v389_v13 = vcombine.low %v108_v25, %v109_v11  ;;  %v287_v11 = vcombine.high %v264_v44, %v6256_v62  ;;  %v428_v25 = vrot.slane %v418_v6, %v6227_v40 }
  0xae   :  { %v77_v28 = vpop.permute.xlu1 %76  ;;  %v6286_v30 = vrot.slane %v58_v15, %v6227_v40  ;;  %v6321_v53 = vrot.slane %v455_v27, %v6227_v40  ;;  %v6355_v16 = vrot.slane %v484_v57, %v6227_v40  ;;  %v567_v27 = vrot.slane %v551_v5, %v6227_v40 }
  0xaf   :  { %v84_v33 = vsel %vm78_vm1, %v6208_v21, %v77_v28  ;;  %v6316_v47 = vrot.slane %v389_v13, %v6227_v40  ;;  %v6369_v28 = vrot.slane %v552_v55, %v6227_v40  ;;  %v303_v24 = vrot.slane %v287_v11, %v6227_v40 }
  0xb0   :  { %v6292_v37 = vrot.slane %v84_v33, %v6227_v40  ;;  %v103_v38 = vpop.permute.xlu0 %102  ;;  %v288_v45 = vcombine.low %v6295_v39, %v6286_v30 }
  0xb1   :  { %v110_v21 = vsel %vm104_vm2, %v6216_v31, %v103_v38  ;;  %v352_v31 = vcombine.low %v330_v32, %v6267_v7 }
  0xb2   :  { %v354_v42 = vcombine.low %v6270_v8, %v6292_v37  ;;  %v129_v43 = vpop.permute.xlu1 %128  ;;  %v6310_v22 = vrot.slane %v110_v21, %v6227_v40  ;;  %v6336_v3 = vrot.slane %v288_v45, %v6227_v40  ;;  %v6383_v21 = vrot.slane %v485_v14, %v6227_v40 }
  0xb3   :  { %v136_v23 = vsel %vm130_vm3, %v127_v1, %v129_v43  ;;  %v353_v1 = vcombine.high %v330_v32, %v6267_v7  ;;  %v6343_v0 = vrot.slane %v352_v31, %v6227_v40  ;;  %v560_v7 = vrot.slane %v550_v2, %v6227_v40 }
  0xb4   :  { %v140_v51 = vpop.permute.xlu0 %139  ;;  %v6324_v54 = vrot.slane %v136_v23, %v6227_v40  ;;  %v6330_v58 = vrot.slane %v354_v42, %v6227_v40  ;;  %v420_v61 = vcombine.low %v6316_v47, %v6310_v22  ;;  %v319_v2 = vcombine.high %v296_v12, %v6336_v3 }
  0xb5   :  { %v6364_v62 = vrot.slane %v353_v1, %v6227_v40  ;;  %v4968_v31 = vcombine.low %v428_v25, %v435_v29  ;;  %v583_v50 = vcombine.high %v560_v7, %v6369_v28 }
  0xb6   :  { %v142_v63 = vpop.permute.xlu1 %141  ;;  %v486_v4 = vcombine.low %v6321_v53, %v6324_v54  ;;  %v385_v18 = vcombine.high %v6343_v0, %v6330_v58  ;;  %v6360_v19 = vrot.slane %v420_v61, %v6227_v40  ;;  %v4964_v43 = vcombine.low %v319_v2, %v6343_v0 }
  0xb7   :  { %v154_v20 = vsel %vm153_vm4, %v140_v51, %v142_v63  ;;  %v4962_v51 = vcombine.low %v296_v12, %v303_v24  ;;  %v4974_v61 = vcombine.low %v560_v7, %v567_v27  ;;  %v961_v5 = vrot.slane %v4968_v31, %v6227_v40 }
  0xb8   :  { %v144_v10 = vpop.permute.xlu0 %143  ;;  %v6352_v15 = vrot.slane %v486_v4, %v6227_v40  ;;  %v451_v32 = vcombine.high %v428_v25, %v6360_v19  ;;  %v4966_v42 = vcombine.low %v6364_v62, %v385_v18 }
  0xb9   :  { %v155_v48 = vsel %vm153_vm4, %v142_v63, %v144_v10  ;;  %v933_v63 = vrot.slane %v4964_v43, %v6227_v40  ;;  %v919_v9 = vrot.slane %v4962_v51, %v6227_v40  ;;  %v1082_v14 = vrot.slane %v4974_v61, %v6227_v40 }
  0xba   :  { %v146_v49 = vpop.permute.xlu1 %145  ;;  %v517_v33 = vcombine.high %v6355_v16, %v6352_v15  ;;  %v585_v13 = vcombine.low %v154_v20, %v155_v48  ;;  %v947_v56 = vrot.slane %v4966_v42, %v6227_v40  ;;  %v4970_v57 = vcombine.low %v451_v32, %v6355_v16  ;;  %v857_v42 = vld [vmem:[%s7636_s3] sm:$0xff] }
  0xbb   :  { %v156_v38 = vsel %vm153_vm4, %v144_v10, %v146_v49  ;;  %v970_v18 = vcombine.high %v919_v9, %v933_v63  ;;  %v969_v29 = vcombine.low %v919_v9, %v933_v63 }
  0xbc   :  { %v6375_v36 = vpop.permute.xlu0 %147  ;;  %v6391_v44 = vrot.slane %v585_v13, %v6227_v40  ;;  %v4972_v46 = vcombine.low %v6383_v21, %v517_v33  ;;  %v974_v11 = vcombine.high %v947_v56, %v961_v5  ;;  %v1054_v7 = vrot.slane %v4970_v57, %v6227_v40 }
  0xbd   :  { %v157_v26 = vsel %vm153_vm4, %v146_v49, %v6375_v36  ;;  %v973_v48 = vcombine.low %v947_v56, %v961_v5  ;;  %v6432_v27 = vrot.slane %v970_v18, %v6227_v40  ;;  %v6461_v56 = vrot.slane %v969_v29, %v6227_v40  ;;  %v862_v29 = vld [vmem:[%s7636_s3 + $0x28] sm:$0xff] }
  0xbe   :  { %v586_v35 = vcombine.low %v156_v38, %v157_v26  ;;  %v6386_v41 = vpop.permute.xlu1 %149  ;;  %v1068_v6 = vrot.slane %v4972_v46, %v6227_v40  ;;  %v6426_v13 = vrot.slane %v974_v11, %v6227_v40  ;;  %v858_v26 = vld [vmem:[%s7636_s3 + $0x8] sm:$0xff]  ;;  %v421_v57 = vcombine.high %v6316_v47, %v6310_v22  ;;  %v860_v11 = vld [vmem:[%s7636_s3 + $0x18] sm:$0xff] }
  0xbf   :  { %v6435_v32 = vrot.slane %v973_v48, %v6227_v40  ;;  %v861_v48 = vld [vmem:[%s7636_s3 + $0x20] sm:$0xff] }
  0xc0   :  { %v6394_v45 = vrot.slane %v586_v35, %v6227_v40  ;;  %v6396_v23 = vpop.permute.xlu0 %151  ;;  %v1105_v20 = vcombine.high %v1054_v7, %v1068_v6  ;;  %v1104_v25 = vcombine.low %v1054_v7, %v1068_v6  ;;  %v553_v35 = vcombine.high %v6249_v59, %v6253_v60 }
  0xc1   :  { %v289_v59 = vcombine.high %v6295_v39, %v6286_v30  ;;  %v355_v60 = vcombine.high %v6270_v8, %v6292_v37  ;;  %v1037_v63 = vcombine.low %v6432_v27, %v6426_v13  ;;  %v859_v8 = vld [vmem:[%s7636_s3 + $0x10] sm:$0xff]  ;;  %v1033_v37 = vcombine.low %v6461_v56, %v6435_v32 }
  0xc2   :  { %v616_v52 = vcombine.low %v6391_v44, %v6394_v45  ;;  %v6402_v55 = vpop.permute.xlu1 %166  ;;  %v6445_v31 = vrot.slane %v1105_v20, %v6227_v40  ;;  %v581_v9 = vrot.slane %v553_v35, %v6227_v40  ;;  %v384_v7 = vcombine.low %v6343_v0, %v6330_v58 }
  0xc3   :  { %v317_v47 = vrot.slane %v289_v59, %v6227_v40  ;;  %v864_v59 = vld [vmem:[%s7636_s3 + $0x38] sm:$0xff] }
  0xc4   :  { %v6408_v1 = vrot.slane %v616_v52, %v6227_v40  ;;  %v6410_v4 = vpop.permute.xlu0 %168  ;;  %v6002_v52 = vmov 0   ;;  %v4975_v0 = vcombine.low %v6369_v28, %v581_v9 }
  0xc5   :  { %5956 = vset.pattern.permute.xlu1 %v6002_v52  ;;  %5955 = vset.pattern.permute.xlu0 %v6002_v52 }
  0xc6   :  { %v6415_v10 = vpop.permute.xlu1 %170  ;;  %v4976_v12 = vcombine.low %v583_v50, %v6408_v1  ;;  %v6451_v50 = vrot.slane %v1104_v25, %v6227_v40  ;;  %872 = vperm.xlu1 %5956, %v858_v26   ;;  %867 = vperm.xlu0 %5955, %v857_v42   ;;  %v4963_v25 = vcombine.low %v6336_v3, %v317_v47 }
  0xc8   :  { %v6420_v49 = vpop.permute.xlu0 %172  ;;  %v1096_v2 = vrot.slane %v4976_v12, %v6227_v40  ;;  %v383_v12 = vrot.slane %v355_v60, %v6227_v40  ;;  %v6507_v52 = vrot.slane %v4963_v25, %v6227_v40 }
  0xca   :  { %v6423_v33 = vpop.permute.xlu1 %174  ;;  %v1109_v24 = vcombine.high %v1082_v14, %v1096_v2  ;;  %v1108_v38 = vcombine.low %v1082_v14, %v1096_v2  ;;  %877 = vperm.xlu1 %5956, %v859_v8   ;;  %v449_v14 = vrot.slane %v421_v57, %v6227_v40  ;;  %v487_v2 = vcombine.high %v6321_v53, %v6324_v54  ;;  %v863_v53 = vld [vmem:[%s7636_s3 + $0x30] sm:$0xff]  ;;  %v1983_v8 = vld [vmem:[%s7638_s5] sm:$0x7] }
  0xcb   :  { %882 = vperm.xlu0 %5955, %v860_v11  }
  0xcc   :  { %v6442_v43 = vpop.permute.xlu0 %176  ;;  %v6448_v46 = vrot.slane %v1109_v24, %v6227_v40  ;;  %v6454_v51 = vrot.slane %v1108_v38, %v6227_v40  ;;  %v386_v24 = vcombine.low %v6364_v62, %v383_v12  ;;  %v4965_v38 = vcombine.high %v6336_v3, %v384_v7 }
  0xcd   :  { %v4969_v26 = vcombine.low %v6360_v19, %v449_v14  ;;  %v515_v54 = vrot.slane %v487_v2, %v6227_v40  ;;  %v159_v3 = vsel %vm153_vm4, %v6386_v41, %v6396_v23  ;;  %v6513_v62 = vrot.slane %v4975_v0, %v6227_v40 }
  0xce   :  { %v6465_v61 = vpop.permute.xlu1 %178  ;;  %v1172_v5 = vcombine.low %v6445_v31, %v6448_v46  ;;  %v1168_v30 = vcombine.low %v6451_v50, %v6454_v51  ;;  %887 = vperm.xlu1 %5956, %v861_v48   ;;  %v4967_v60 = vcombine.high %v386_v24, %v6330_v58  ;;  %v158_v58 = vsel %vm153_vm4, %v6375_v36, %v6386_v41 }
  0xcf   :  { %892 = vperm.xlu0 %5955, %v862_v29   ;;  %v6520_v57 = vrot.slane %v4969_v26, %v6227_v40  ;;  %v186_v47 = vsel %vm180_vm5, %v6442_v43, %v6465_v61  ;;  %v587_v9 = vcombine.low %v158_v58, %v159_v3  ;;  %v182_v36 = vsel %vm180_vm5, %v6410_v4, %v6415_v10 }
  0xd0   :  { %v6478_v39 = vpop.permute.xlu0 %193  ;;  %v5348_v22 = vpack.c.bf16 %v1172_v5, %v1037_v63  ;;  %v5350_v6 = vpack.c.bf16 %v1168_v30, %v1033_v37  ;;  %v6524_v30 = vrot.slane %v4965_v38, %v6227_v40  ;;  %v516_v37 = vcombine.low %v6355_v16, %v6352_v15 }
  0xd1   :  { %v183_v41 = vsel %vm180_vm5, %v6415_v10, %v6420_v49  ;;  %v185_v7 = vsel %vm180_vm5, %v6423_v33, %v6442_v43  ;;  %v181_v10 = vsel %vm180_vm5, %v6402_v55, %v6410_v4 }
  0xd2   :  { %v196_v18 = vpop.permute.xlu1 %195  ;;  %5349 = vmatprep.subr.bf16.mxu0 %v5348_v22  ;;  %5928 = vmatprep.subr.bf16.mxu1 %v5348_v22  ;;  %v184_v22 = vsel %vm180_vm5, %v6420_v49, %v6423_v33  ;;  %v653_v48 = vcombine.low %v185_v7, %v186_v47  ;;  %v4971_v0 = vcombine.high %v6360_v19, %v516_v37 }
  0xd3   :  { %5351 = vmatpush1.bf16.msra.mxu0 %v5350_v6  ;;  %5930 = vmatpush1.bf16.msra.mxu1 %v5350_v6  ;;  %v518_v6 = vcombine.low %v6383_v21, %v515_v54  ;;  %v652_v14 = vcombine.low %v183_v41, %v184_v22  ;;  %v208_v2 = vsel %vm207_vm6, %v6478_v39, %v196_v18 }
  0xd4   :  { %v198_v20 = vpop.permute.xlu0 %197  ;;  %897 = vperm.xlu1 %5956, %v863_v53   ;;  %902 = vperm.xlu0 %5955, %v864_v59   ;;  %v651_v43 = vcombine.low %v181_v10, %v182_v36  ;;  %v6564_v39 = vrot.slane %v4967_v60, %v6227_v40 }
  0xd5   :  { %v209_v11 = vsel %vm207_vm6, %v196_v18, %v198_v20  ;;  %v608_v18 = vrot.slane %v587_v9, %v6227_v40  ;;  %v667_v4 = vrot.slane %v652_v14, %v6227_v40 }
  0xd6   :  { %v200_v35 = vpop.permute.xlu1 %199  ;;  %v717_v49 = vcombine.low %v208_v2, %v209_v11  ;;  %v660_v60 = vrot.slane %v651_v43, %v6227_v40  ;;  %v1038_v11 = vcombine.high %v6432_v27, %v6426_v13  ;;  %v6607_v2 = vrot.slane %v4971_v0, %v6227_v40 }
  0xd7   :  { %v210_v12 = vsel %vm207_vm6, %v198_v20, %v200_v35 }
  0xd8   :  { %v202_v42 = vpop.permute.xlu0 %201  ;;  %2311 = vperm.xlu1 %5956, %v1983_v8   ;;  %v726_v3 = vrot.slane %v717_v49, %v6227_v40  ;;  %v682_v47 = vcombine.low %v660_v60, %v667_v4 }
  0xd9   :  { %v211_v63 = vsel %vm207_vm6, %v200_v35, %v202_v42  ;;  %v6574_v35 = vrot.slane %v653_v48, %v6227_v40 }
  0xda   :  { %v204_v5 = vpop.permute.xlu1 %203  ;;  %v718_v21 = vcombine.low %v210_v12, %v211_v63  ;;  %v972_v63 = vcombine.high %v6507_v52, %v6524_v30  ;;  %v683_v12 = vcombine.high %v660_v60, %v667_v4 }
  0xdb   :  { %v212_v29 = vsel %vm207_vm6, %v202_v42, %v204_v5  ;;  %v4973_v42 = vcombine.high %v518_v6, %v6352_v15  ;;  %v1034_v6 = vcombine.high %v6461_v56, %v6435_v32  ;;  %v850_v56 = vld [vmem:[%s7635_s2 + $0x8] sm:$0xff] }
  0xdc   :  { %v206_v16 = vpop.permute.xlu0 %205  ;;  %v733_v19 = vrot.slane %v718_v21, %v6227_v40  ;;  %v6601_v14 = vrot.slane %v972_v63, %v6227_v40  ;;  %v699_v0 = vrot.slane %v683_v12, %v6227_v40 }
  0xdd   :  { %v213_v20 = vsel %vm207_vm6, %v204_v5, %v206_v16  ;;  %v976_v5 = vcombine.high %v6564_v39, %v6520_v57  ;;  %v6613_v49 = vrot.slane %v4973_v42, %v6227_v40 }
  0xde   :  { %v162_v25 = vpop.permute.xlu1 %161  ;;  %v719_v26 = vcombine.low %v212_v29, %v213_v20  ;;  %v748_v8 = vcombine.low %v726_v3, %v733_v19 }
  0xdf   :  { %v165_v33 = vsel %vm164_vm7, %v6396_v23, %v162_v25  ;;  %v617_v23 = vcombine.high %v6391_v44, %v6394_v45  ;;  %v6604_v48 = vrot.slane %v976_v5, %v6227_v40  ;;  %v1107_v5 = vcombine.high %v6607_v2, %v6613_v49 }
  0xe0   :  { %v615_v24 = vrot.slane %v165_v33, %v6227_v40  ;;  %v189_v38 = vpop.permute.xlu0 %188  ;;  %v740_v15 = vrot.slane %v719_v26, %v6227_v40  ;;  %v758_v20 = vrot.slane %v748_v8, %v6227_v40  ;;  %v692_v33 = vrot.slane %v682_v47, %v6227_v40 }
  0xe1   :  { %v192_v55 = vsel %vm191_vm8, %v6465_v61, %v189_v38  ;;  %v633_v22 = vrot.slane %v617_v23, %v6227_v40  ;;  %v971_v38 = vcombine.low %v6507_v52, %v6524_v30  ;;  %v1039_v52 = vcombine.low %v6601_v14, %v6604_v48 }
  0xe2   :  { %v6577_v53 = vrot.slane %v192_v55, %v6227_v40  ;;  %v216_v54 = vpop.permute.xlu1 %215  ;;  %v618_v59 = vcombine.low %v608_v18, %v615_v24  ;;  %v619_v37 = vcombine.high %v608_v18, %v615_v24  ;;  %v975_v30 = vcombine.low %v6564_v39, %v6520_v57  ;;  %v6728_v39 = vld [vmem:[%s7635_s2] sm:$0xff] }
  0xe3   :  { %v219_v61 = vsel %vm218_vm9, %v206_v16, %v216_v54  ;;  %v749_v16 = vcombine.high %v726_v3, %v733_v19 }
  0xe4   :  { %v684_v44 = vcombine.low %v6574_v35, %v6577_v53  ;;  %v221_v45 = vpop.permute.xlu0 %220  ;;  %v747_v58 = vrot.slane %v219_v61, %v6227_v40  ;;  %v640_v36 = vrot.slane %v618_v59, %v6227_v40  ;;  %v647_v25 = vrot.slane %v619_v37, %v6227_v40 }
  0xe5   :  { %v765_v18 = vrot.slane %v749_v16, %v6227_v40  ;;  %v685_v23 = vcombine.high %v6574_v35, %v6577_v53 }
  0xe6   :  { %v223_v9 = vpop.permute.xlu1 %222  ;;  %v750_v41 = vcombine.low %v740_v15, %v747_v58  ;;  %v6598_v7 = vrot.slane %v684_v44, %v6227_v40  ;;  %v751_v43 = vcombine.high %v740_v15, %v747_v58  ;;  %v648_v19 = vcombine.low %v6408_v1, %v640_v36 }
  0xe7   :  { %v649_v55 = vcombine.high %v6408_v1, %v640_v36  ;;  %v235_v54 = vsel %vm234_vm10, %v221_v45, %v223_v9  ;;  %v650_v3 = vcombine.low %v633_v22, %v647_v25  ;;  %v4980_v44 = vcombine.low %v692_v33, %v699_v0 }
  0xe8   :  { %v225_v21 = vpop.permute.xlu0 %224  ;;  %v772_v10 = vrot.slane %v750_v41, %v6227_v40  ;;  %v715_v4 = vcombine.high %v692_v33, %v6598_v7  ;;  %v779_v61 = vrot.slane %v751_v43, %v6227_v40  ;;  %v4977_v45 = vcombine.high %v6369_v28, %v648_v19 }
  0xe9   :  { %v236_v29 = vsel %vm234_vm10, %v223_v9, %v225_v21  ;;  %v4978_v8 = vcombine.low %v633_v22, %v649_v55  ;;  %v713_v15 = vrot.slane %v685_v23, %v6227_v40 }
  0xea   :  { %v227_v24 = vpop.permute.xlu1 %226  ;;  %v781_v26 = vcombine.high %v758_v20, %v772_v10  ;;  %v783_v59 = vcombine.low %v235_v54, %v236_v29  ;;  %v4982_v37 = vcombine.low %v715_v4, %v758_v20  ;;  %v780_v58 = vcombine.low %v758_v20, %v772_v10 }
  0xeb   :  { %v237_v1 = vsel %vm234_vm10, %v225_v21, %v227_v24  ;;  %v4979_v21 = vcombine.high %v650_v3, %v640_v36  ;;  %v782_v28 = vcombine.low %v765_v18, %v779_v61  ;;  %v1103_v20 = vrot.slane %v4977_v45, %v6227_v40 }
  0xec   :  { %v229_v42 = vpop.permute.xlu0 %228  ;;  %v4984_v60 = vcombine.low %v765_v18, %v781_v26  ;;  %v792_v9 = vrot.slane %v783_v59, %v6227_v40  ;;  %v1189_v0 = vrot.slane %v4978_v8, %v6227_v40  ;;  %v4981_v19 = vcombine.low %v6598_v7, %v713_v15 }
  0xed   :  { %v238_v35 = vsel %vm234_vm10, %v227_v24, %v229_v42  ;;  %v1217_v36 = vrot.slane %v4982_v37, %v6227_v40  ;;  %v4983_v18 = vcombine.high %v6598_v7, %v780_v58  ;;  %v4985_v54 = vcombine.high %v782_v28, %v772_v10 }
  0xee   :  { %v231_v53 = vpop.permute.xlu1 %230  ;;  %v784_v63 = vcombine.low %v237_v1, %v238_v35  ;;  %v1231_v25 = vrot.slane %v4984_v60, %v6227_v40  ;;  %v6654_v59 = vrot.slane %v971_v38, %v6227_v40  ;;  %v1203_v61 = vrot.slane %v4980_v44, %v6227_v40 }
  0xef   :  { %v239_v16 = vsel %vm234_vm10, %v229_v42, %v231_v53  ;;  %v1111_v35 = vcombine.high %v6513_v62, %v1103_v20  ;;  %v1224_v38 = vrot.slane %v4983_v18, %v6227_v40  ;;  %v1238_v44 = vrot.slane %v4985_v54, %v6227_v40 }
  0xf0   :  { %v233_v47 = vpop.permute.xlu0 %232  ;;  %v799_v12 = vrot.slane %v784_v63, %v6227_v40  ;;  %v1244_v60 = vcombine.high %v1217_v36, %v1231_v25  ;;  %v1243_v1 = vcombine.low %v1217_v36, %v1231_v25  ;;  %v6664_v63 = vrot.slane %v4981_v19, %v6227_v40 }
  0xf1   :  { %v240_v41 = vsel %vm234_vm10, %v231_v53, %v233_v47  ;;  %v6659_v53 = vrot.slane %v4979_v21, %v6227_v40  ;;  %v1240_v8 = vcombine.high %v1189_v0, %v1203_v61  ;;  %v1239_v15 = vcombine.low %v1189_v0, %v1203_v61 }
  0xf2   :  { %v785_v33 = vcombine.low %v239_v16, %v240_v41  ;;  %v243_v43 = vpop.permute.xlu1 %242  ;;  %v814_v22 = vcombine.low %v792_v9, %v799_v12  ;;  %v815_v29 = vcombine.high %v792_v9, %v799_v12  ;;  %v1295_v9 = vrot.slane %v1244_v60, %v6227_v40 }
  0xf3   :  { %v246_v24 = vsel %vm245_vm11, %v233_v47, %v243_v43  ;;  %v6670_v12 = vrot.slane %v1243_v1, %v6227_v40  ;;  %v1167_v16 = vrot.slane %v1111_v35, %v6227_v40  ;;  %v1110_v41 = vcombine.low %v6513_v62, %v1103_v20 }
  0xf4   :  { %v806_v26 = vrot.slane %v785_v33, %v6227_v40  ;;  %v813_v55 = vrot.slane %v246_v24, %v6227_v40  ;;  %v824_v23 = vrot.slane %v814_v22, %v6227_v40  ;;  %v831_v4 = vrot.slane %v815_v29, %v6227_v40 }
  0xf5   :  { %v1267_v43 = vrot.slane %v1240_v8, %v6227_v40  ;;  %v6680_v22 = vrot.slane %v1239_v15, %v6227_v40  ;;  %v1139_v29 = vrot.slane %v1107_v5, %v6227_v40  ;;  %v1106_v24 = vcombine.low %v6607_v2, %v6613_v49 }
  0xf6   :  { %v816_v42 = vcombine.low %v806_v26, %v813_v55  ;;  %v817_v3 = vcombine.high %v806_v26, %v813_v55  ;;  %v4986_v7 = vcombine.low %v824_v23, %v831_v4  ;;  %v1173_v20 = vcombine.high %v6445_v31, %v6448_v46 }
  0xf7   :  { %v1246_v19 = vcombine.high %v1224_v38, %v1238_v44  ;;  %v1242_v26 = vcombine.high %v6659_v53, %v6664_v63  ;;  %v1307_v55 = vcombine.low %v1267_v43, %v1295_v9  ;;  %v1303_v36 = vcombine.low %v6680_v22, %v6670_v12 }
  0xf8   :  { %v838_v45 = vrot.slane %v816_v42, %v6227_v40  ;;  %v845_v10 = vrot.slane %v817_v3, %v6227_v40  ;;  %v1319_v21 = vrot.slane %v4986_v7, %v6227_v40  ;;  %v1153_v18 = vrot.slane %v1110_v41, %v6227_v40 }
  0xf9   :  { %v1174_v2 = vcombine.low %v1139_v29, %v1167_v16  ;;  %v1169_v4 = vcombine.high %v6451_v50, %v6454_v51  ;;  %v1245_v31 = vcombine.low %v1224_v38, %v1238_v44  ;;  %v1018_v54 = vrot.slane %v975_v30, %v6227_v40 }
  0xfa   :  { %v847_v37 = vcombine.high %v824_v23, %v838_v45  ;;  %v4987_v58 = vcombine.low %v838_v45, %v845_v10  ;;  %v4988_v47 = vcombine.high %v838_v45, %v838_v45  ;;  %v1125_v42 = vrot.slane %v1106_v24, %v6227_v40 }
  0xfb   :  { %v5358_v50 = vpack.c.bf16 %v1173_v20, %v1038_v11  ;;  %v1302_v51 = vrot.slane %v1246_v19, %v6227_v40  ;;  %v1241_v60 = vcombine.low %v6659_v53, %v6664_v63  ;;  %v1274_v7 = vrot.slane %v1242_v26, %v6227_v40  ;;  %v6733_v11 = vld [vmem:[%s7635_s2 + $0x30] sm:$0xff]  ;;  %v6863_v26 = vld [vmem:[%s7634_s1] sm:$0x7f] }
  0xfc   :  { %v1326_v28 = vrot.slane %v4987_v58, %v6227_v40  ;;  %v1333_v25 = vrot.slane %v847_v37, %v6227_v40  ;;  %v1340_v33 = vrot.slane %v4988_v47, %v6227_v40  ;;  %v1170_v35 = vcombine.low %v1125_v42, %v1153_v18 }
  0xfd   :  { %v5368_v13 = vpack.c.bf16 %v1174_v2, %v1039_v52  ;;  %v1035_v14 = vcombine.low %v6654_v59, %v1018_v54  ;;  %v1288_v48 = vrot.slane %v1245_v31, %v6227_v40  ;;  %v5360_v52 = vpack.c.bf16 %v1169_v4, %v1034_v6 }
  0xfe   :  { %v1342_v0 = vcombine.high %v1319_v21, %v1333_v25  ;;  %v1341_v62 = vcombine.low %v1319_v21, %v1333_v25  ;;  %v1344_v49 = vcombine.high %v1326_v28, %v1340_v33  ;;  %v1343_v1 = vcombine.low %v1326_v28, %v1340_v33  ;;  %v852_v21 = vld [vmem:[%s7635_s2 + $0x18] sm:$0xff]  ;;  %v853_v28 = vld [vmem:[%s7635_s2 + $0x20] sm:$0xff]  ;;  %v854_v25 = vld [vmem:[%s7635_s2 + $0x28] sm:$0xff] }
  0xff   :  { %v1308_v30 = vcombine.high %v1267_v43, %v1295_v9  ;;  %v1309_v53 = vcombine.low %v1274_v7, %v1302_v51  ;;  %v1260_v45 = vrot.slane %v1241_v60, %v6227_v40  ;;  %v5370_v63 = vpack.c.bf16 %v1170_v35, %v1035_v14 }
 0x100   :  { %v1365_v5 = vrot.slane %v1342_v0, %v6227_v40  ;;  %v1351_v23 = vrot.slane %v1341_v62, %v6227_v40  ;;  %v1372_v57 = vrot.slane %v1344_v49, %v6227_v40  ;;  %v1358_v38 = vrot.slane %v1343_v1, %v6227_v40  ;;  %v6754_v40 = vld [vmem:[%s7635_s2 + $0x38] sm:$0xff] }
 0x101   :  { %v1171_v44 = vcombine.high %v1125_v42, %v1153_v18  ;;  %v1304_v32 = vcombine.high %v6680_v22, %v6670_v12  ;;  %v1305_v6 = vcombine.low %v1260_v45, %v1288_v48  ;;  %v1036_v37 = vcombine.high %v6654_v59, %v1018_v54  ;;  %v851_v59 = vld [vmem:[%s7635_s2 + $0x10] sm:$0xff] }
 0x102   :  { %v5352_v3 = vpack.c.bf16 %v1365_v5, %v1307_v55  ;;  %v5355_v61 = vpack.c.bf16 %v1351_v23, %v1303_v36  ;;  %v1375_v27 = vcombine.high %v1365_v5, %v1365_v5  ;;  %v1373_v10 = vcombine.high %v1351_v23, %v1351_v23 }
 0x103   :  { %v5372_v15 = vpack.c.bf16 %v1372_v57, %v1309_v53  ;;  %v5375_v47 = vpack.c.bf16 %v1358_v38, %v1305_v6  ;;  %v5378_v9 = vpack.c.bf16 %v1171_v44, %v1036_v37  ;;  %v1374_v12 = vcombine.high %v1358_v38, %v1358_v38 }
 0x104   :  { %5354 = vmatprep.subr.msk.bf16.mxu0 %vm6697_vm14, %v5352_v3  ;;  %5929 = vmatprep.subr.msk.bf16.mxu1 %vm6697_vm14, %v5352_v3  ;;  %v5362_v8 = vpack.c.bf16 %v1375_v27, %v1308_v30  ;;  %v5365_v58 = vpack.c.bf16 %v1373_v10, %v1304_v32  ;;  %v1306_v16 = vcombine.high %v1260_v45, %v1288_v48  ;;  %v1885_v20 = vsub.s32 0, %v6218_v34 }
 0x105   :  { %5357 = vmatpush1.bf16.msk.msra.mxu0 %vm6697_vm14, %v5355_v61  ;;  %5931 = vmatpush1.bf16.msk.msra.mxu1 %vm6697_vm14, %v5355_v61  ;;  %v1889_v36 = vsub.s32 1, %v6218_v34  ;;  %v1893_v35 = vsub.s32 2, %v6218_v34  ;;  %v1897_v57 = vsub.s32 3, %v6218_v34 }
 0x106   :  { %5359 = vmatprep.subr.bf16.mxu1 %v5358_v50  ;;  %5369 = vmatprep.subr.bf16.mxu0 %v5368_v13  ;;  %v5382_v41 = vpack.c.bf16 %v1374_v12, %v1306_v16  ;;  %v6872_v31 = vrot.slane %v6863_v26, %v1885_v20 }
 0x107   :  { %v6876_v54 = vrot.slane %v6863_v26, %v1889_v36  ;;  %v6906_v6 = vrot.slane %v6863_v26, %v1897_v57 }
 0x108   :  { %4991 = vmatmul.mubr.msk.f32.vlgmr.msra.gmra.mrb[0].mxu0 %vm1397_vm15, %v6728_v39  ;;  %4997 = vmatmul.mubr.msk.f32.vlgmr.msra.gmra.mrb[0].mxu1 %vm1397_vm15, %v6733_v11 }
 0x109   :  { %5361 = vmatpush1.bf16.msra.mxu1 %v5360_v52  ;;  %5371 = vmatpush1.bf16.msra.mxu0 %v5370_v63 }
 0x10a   :  { %5364 = vmatprep.subr.msk.bf16.mxu1 %vm6697_vm14, %v5362_v8  ;;  %5374 = vmatprep.subr.msk.bf16.mxu0 %vm6697_vm14, %v5372_v15  ;;  %v6898_v8 = vrot.slane %v6863_v26, %v1893_v35 }
 0x10b   :  { %1507 = vmatprep.mubr.f32.mxu0 %v6000_v17  ;;  %1543 = vmatprep.mubr.f32.mxu1 %v6000_v17 }
 0x10c   :  { %4992 = vmatmul.mubr.msk.f32.gmra.mrb[2].mxu0 %vm1397_vm15, %v850_v56  ;;  %4998 = vmatmul.mubr.msk.f32.gmra.mrb[2].mxu1 %vm1397_vm15, %v6754_v40 }
 0x10d   :  { %5367 = vmatpush1.bf16.msk.msra.mxu1 %vm6697_vm14, %v5365_v58  ;;  %5377 = vmatpush1.bf16.msk.msra.mxu0 %vm6697_vm14, %v5375_v47 }
 0x10e   :  { %5379 = vmatprep.subr.bf16.mxu1 %v5378_v9  ;;  %1513 = vmatprep.mubr.f32.mxu0 %v6000_v17 }
 0x10f   :  { %1614 = vmatprep.mubr.f32.mxu1 %v6000_v17 }
 0x110   :  { %4993 = vmatmul.mubr.msk.f32.gmra.mrb[4].mxu0 %vm1397_vm15, %v851_v59  ;;  %5001 = vmatmul.mubr.msk.f32.vlgmr.msra.gmra.mrb[4].mxu1 %vm1397_vm15, %v6728_v39 }
 0x111   :  { %5381 = vmatpush3.bf16.msra.mxu1 %v5378_v9  ;;  %1519 = vmatprep.mubr.f32.mxu0 %v6000_v17 }
 0x112   :  { %5384 = vmatprep.subr.msk.bf16.mxu1 %vm6697_vm14, %v5382_v41  ;;  %1620 = vmatprep.mubr.f32.mxu1 %v6000_v17 }
 0x114   :  { %4994 = vmatmul.mubr.msk.f32.gmra.mrb[6].mxu0 %vm1397_vm15, %v852_v21  ;;  %5002 = vmatmul.mubr.msk.f32.gmra.mrb[6].mxu1 %vm1397_vm15, %v850_v56 }
 0x115   :  { %5387 = vmatpush3.bf16.msk.msra.mxu1 %vm6697_vm14, %v5382_v41  ;;  %1525 = vmatprep.mubr.f32.mxu0 %v6000_v17 }
 0x116   :  { %1626 = vmatprep.mubr.f32.mxu1 %v6000_v17 }
 0x118   :  { %4995 = vmatmul.mubr.msk.f32.gmra.mrb[8].mxu0 %vm1397_vm15, %v853_v28  ;;  %5003 = vmatmul.mubr.msk.f32.gmra.mrb[8].mxu1 %vm1397_vm15, %v851_v59 }
 0x119   :  { %1531 = vmatprep.mubr.f32.mxu0 %v6000_v17  ;;  %1632 = vmatprep.mubr.f32.mxu1 %v6000_v17 }
 0x11c   :  { %4996 = vmatmul.mubr.msk.f32.gmra.mrb[10].mxu0 %vm1397_vm15, %v854_v25  ;;  %5004 = vmatmul.mubr.msk.f32.gmra.mrb[10].mxu1 %vm1397_vm15, %v852_v21 }
 0x11d   :  { %1638 = vmatprep.mubr.f32.mxu1 %v6000_v17  ;;  %1727 = vmatprep.mubr.f32.mxu0 %v6000_v17 }
 0x120   :  { %5005 = vmatmul.mubr.msk.f32.gmra.mrb[12].mxu1 %vm1397_vm15, %v853_v28  ;;  %5011 = vmatmul.mubr.msk.f32.vlgmr.msra.gmra.mrb[12].mxu0 %vm1397_vm15, %v6728_v39 }
 0x121   :  { %1644 = vmatprep.mubr.f32.mxu1 %v6000_v17  ;;  %1733 = vmatprep.mubr.f32.mxu0 %v6000_v17 }
 0x124   :  { %5006 = vmatmul.mubr.msk.f32.gmra.mrb[14].mxu1 %vm1397_vm15, %v854_v25  ;;  %5012 = vmatmul.mubr.msk.f32.gmra.mrb[14].mxu0 %vm1397_vm15, %v850_v56 }
 0x125   :  { %1650 = vmatprep.mubr.f32.mxu1 %v6000_v17  ;;  %1739 = vmatprep.mubr.f32.mxu0 %v6000_v17 }
 0x128   :  { %5007 = vmatmul.mubr.msk.f32.gmra.mrb[16].mxu1 %vm1397_vm15, %v6733_v11  ;;  %5013 = vmatmul.mubr.msk.f32.gmra.mrb[16].mxu0 %vm1397_vm15, %v851_v59 }
 0x129   :  { %1656 = vmatprep.mubr.f32.mxu1 %v6000_v17  ;;  %1745 = vmatprep.mubr.f32.mxu0 %v6000_v17 }
 0x12c   :  { %5008 = vmatmul.mubr.msk.f32.gmra.mrb[18].mxu1 %vm1397_vm15, %v6754_v40  ;;  %5014 = vmatmul.mubr.msk.f32.gmra.mrb[18].mxu0 %vm1397_vm15, %v852_v21 }
 0x12d   :  { %1751 = vmatprep.mubr.f32.mxu0 %v6000_v17  ;;  %5165 = vmatprep.mubr.msk.f32.mxu1 %vm1397_vm15, %v6728_v39 }
 0x130   :  { %5015 = vmatmul.mubr.msk.f32.gmra.mrb[20].mxu0 %vm1397_vm15, %v853_v28  ;;  %5166 = vmatmul.mubr.msk.f32.vlgmr.msra.gmra.mrb[20].mxu1 %vm1397_vm15, %v850_v56 }
 0x131   :  { %1757 = vmatprep.mubr.f32.mxu0 %v6000_v17  ;;  %5168 = vmatprep.mubr.msk.f32.mxu1 %vm1397_vm15, %v851_v59 }
 0x134   :  { %5016 = vmatmul.mubr.msk.f32.gmra.mrb[22].mxu0 %vm1397_vm15, %v854_v25  ;;  %5169 = vmatmul.mubr.msk.f32.gmra.mrb[22].mxu1 %vm1397_vm15, %v852_v21 }
 0x135   :  { %1763 = vmatprep.mubr.f32.mxu0 %v6000_v17  ;;  %5171 = vmatprep.mubr.msk.f32.mxu1 %vm1397_vm15, %v853_v28 }
 0x138   :  { %5017 = vmatmul.mubr.msk.f32.gmra.mrb[24].mxu0 %vm1397_vm15, %v6733_v11  ;;  %5172 = vmatmul.mubr.msk.f32.gmra.mrb[24].mxu1 %vm1397_vm15, %v854_v25 }
 0x139   :  { %1769 = vmatprep.mubr.f32.mxu0 %v6000_v17  ;;  %5174 = vmatprep.mubr.msk.f32.mxu1 %vm1397_vm15, %v6733_v11 }
 0x13c   :  { %5018 = vmatmul.mubr.msk.f32.gmra.mrb[26].mxu0 %vm1397_vm15, %v6754_v40  ;;  %5175 = vmatmul.mubr.msk.f32.gmra.mrb[26].mxu1 %vm1397_vm15, %v6754_v40 }
 0x13d   :  { %2052 = vmatprep.mubr.f32.mxu1 %v6000_v17  ;;  %2123 = vmatprep.mubr.f32.mxu0 %v6000_v17 }
 0x145   :  { %v6845_v33 = vpop.permute.xlu1 %872  ;;  %v6847_v43 = vpop.permute.xlu0 %867 }
 0x149   :  { %v6849_v22 = vpop.permute.xlu1 %877 }
 0x14a   :  { %v6851_v29 = vpop.permute.xlu0 %882 }
 0x14d   :  { %v6853_v24 = vpop.permute.xlu1 %887 }
 0x14e   :  { %v6855_v0 = vpop.permute.xlu0 %892 }
 0x153   :  { %v6857_v62 = vpop.permute.xlu1 %897  ;;  %v6868_v49 = vpop.permute.xlu0 %902 }
 0x1db   :  { %v1503_v19 = vpop.f32.mrb[0].mxu0  ;;  %v1539_v55 = vpop.f32.mrb[0].mxu1 }
 0x1dc   :  { %v1505_v18 = vpop.f32.mrb[1].mxu0  ;;  %v1541_v5 = vpop.f32.mrb[1].mxu1  ;;  %v1540_v23 = vadd.f32 %v1539_v55, %v6857_v62  ;;  %v1504_v4 = vadd.f32 %v1503_v19, %v6847_v43 }
 0x1dd   :  { %v1542_v2 = vadd.f32 %v1541_v5, %v6857_v62  ;;  %v1506_v46 = vadd.f32 %v1505_v18, %v6847_v43 }
 0x1de   :  { %v1960_v51 = vmul.f32 %v6872_v31, %v1540_v23  ;;  %v1918_v39 = vmul.f32 %v6872_v31, %v1504_v4 }
 0x1df   :  { %v1509_v42 = vpop.f32.mrb[2].mxu0  ;;  %v1545_v3 = vpop.f32.mrb[2].mxu1  ;;  %v1961_v7 = vmul.f32 %v6876_v54, %v1542_v2  ;;  %v1919_v48 = vmul.f32 %v6876_v54, %v1506_v46 }
 0x1e0   :  { %v1510_v61 = vadd.f32 %v1509_v42, %v6845_v33  ;;  %v1546_v50 = vadd.f32 %v1545_v3, %v6868_v49  ;;  %v1511_v60 = vpop.f32.mrb[3].mxu0  ;;  %v1547_v1 = vpop.f32.mrb[3].mxu1 }
 0x1e1   :  { %v1512_v13 = vadd.f32 %v1511_v60, %v6845_v33  ;;  %v1548_v27 = vadd.f32 %v1547_v1, %v6868_v49 }
 0x1e2   :  { %v1925_v11 = vmul.f32 %v6872_v31, %v1510_v61  ;;  %v1967_v14 = vmul.f32 %v6872_v31, %v1546_v50 }
 0x1e3   :  { %v1926_v52 = vmul.f32 %v6876_v54, %v1512_v13  ;;  %v1968_v30 = vmul.f32 %v6876_v54, %v1548_v27  ;;  %v1515_v53 = vpop.f32.mrb[4].mxu0  ;;  %v1616_v45 = vpop.f32.mrb[4].mxu1 }
 0x1e4   :  { %v6892_v10 = vpack.c.bf16 %v1925_v11, %v1918_v39  ;;  %v6894_v63 = vpack.c.bf16 %v1967_v14, %v1960_v51  ;;  %v1617_v38 = vadd.f32 %v1616_v45, %v6847_v43  ;;  %v1517_v15 = vpop.f32.mrb[5].mxu0  ;;  %v1618_v44 = vpop.f32.mrb[5].mxu1  ;;  %v1516_v37 = vadd.f32 %v1515_v53, %v6849_v22 }
 0x1e5   :  { %v6900_v32 = vpack.c.bf16 %v1926_v52, %v1919_v48  ;;  %v6902_v56 = vpack.c.bf16 %v1968_v30, %v1961_v7  ;;  %v1619_v40 = vadd.f32 %v1618_v44, %v6847_v43  ;;  %v1518_v58 = vadd.f32 %v1517_v15, %v6849_v22 }
 0x1e6   :  { %v1920_v12 = vmul.f32 %v6898_v8, %v1617_v38  ;;  %v1932_v19 = vmul.f32 %v6872_v31, %v1516_v37  ;;  %v1901_v44 = vsub.s32 4, %v6218_v34 }
 0x1e7   :  { %v1521_v47 = vpop.f32.mrb[6].mxu0  ;;  %v1622_v9 = vpop.f32.mrb[6].mxu1  ;;  %5389 = vmatprep.subr.bf16.mxu1 %v6900_v32  ;;  %v1921_v28 = vmul.f32 %v6906_v6, %v1619_v40  ;;  %v1933_v18 = vmul.f32 %v6876_v54, %v1518_v58 }
 0x1e8   :  { %v1522_v59 = vadd.f32 %v1521_v47, %v6851_v29  ;;  %v1623_v16 = vadd.f32 %v1622_v9, %v6845_v33  ;;  %v1523_v41 = vpop.f32.mrb[7].mxu0  ;;  %v1624_v21 = vpop.f32.mrb[7].mxu1  ;;  %5391 = vmatpush1.bf16.msra.mxu1 %v6892_v10 }
 0x1e9   :  { %v1524_v25 = vadd.f32 %v1523_v41, %v6851_v29  ;;  %v1625_v20 = vadd.f32 %v1624_v21, %v6845_v33 }
 0x1ea   :  { %v1939_v55 = vmul.f32 %v6872_v31, %v1522_v59  ;;  %v1927_v36 = vmul.f32 %v6898_v8, %v1623_v16 }
 0x1eb   :  { %v1940_v5 = vmul.f32 %v6876_v54, %v1524_v25  ;;  %v1928_v23 = vmul.f32 %v6906_v6, %v1625_v20  ;;  %v1527_v2 = vpop.f32.mrb[8].mxu0  ;;  %v1628_v4 = vpop.f32.mrb[8].mxu1  ;;  %v6965_v20 = vrot.slane %v6863_v26, %v1901_v44 }
 0x1ec   :  { %v6924_v46 = vpack.c.bf16 %v1939_v55, %v1932_v19  ;;  %v6926_v42 = vpack.c.bf16 %v1927_v36, %v1920_v12  ;;  %v1629_v3 = vadd.f32 %v1628_v4, %v6849_v22  ;;  %v1529_v61 = vpop.f32.mrb[9].mxu0  ;;  %v1630_v50 = vpop.f32.mrb[9].mxu1  ;;  %v1528_v35 = vadd.f32 %v1527_v2, %v6853_v24 }
 0x1ed   :  { %v6929_v51 = vpack.c.bf16 %v1940_v5, %v1933_v18  ;;  %v6931_v60 = vpack.c.bf16 %v1928_v23, %v1921_v28  ;;  %v1631_v1 = vadd.f32 %v1630_v50, %v6849_v22  ;;  %v1530_v7 = vadd.f32 %v1529_v61, %v6853_v24 }
 0x1ee   :  { %v1934_v57 = vmul.f32 %v6898_v8, %v1629_v3  ;;  %v1946_v45 = vmul.f32 %v6872_v31, %v1528_v35  ;;  %v1905_v12 = vsub.s32 5, %v6218_v34 }
 0x1ef   :  { %v1533_v13 = vpop.f32.mrb[10].mxu0  ;;  %v1634_v27 = vpop.f32.mrb[10].mxu1  ;;  %5393 = vmatprep.subr.bf16.mxu1 %v6929_v51  ;;  %5405 = vmatprep.subr.bf16.mxu0 %v6931_v60  ;;  %v1935_v52 = vmul.f32 %v6906_v6, %v1631_v1  ;;  %v1947_v40 = vmul.f32 %v6876_v54, %v1530_v7 }
 0x1f0   :  { %v1534_v39 = vadd.f32 %v1533_v13, %v6855_v0  ;;  %v1635_v11 = vadd.f32 %v1634_v27, %v6851_v29  ;;  %v1535_v14 = vpop.f32.mrb[11].mxu0  ;;  %v1636_v48 = vpop.f32.mrb[11].mxu1  ;;  %5395 = vmatpush1.bf16.msra.mxu1 %v6924_v46  ;;  %5407 = vmatpush1.bf16.msra.mxu0 %v6926_v42  ;;  %v6970_v36 = vrot.slane %v6863_v26, %v1905_v12 }
 0x1f1   :  { %v1536_v30 = vadd.f32 %v1535_v14, %v6855_v0  ;;  %v1637_v53 = vadd.f32 %v1636_v48, %v6851_v29 }
 0x1f2   :  { %v1953_v38 = vmul.f32 %v6872_v31, %v1534_v39  ;;  %v1941_v15 = vmul.f32 %v6898_v8, %v1635_v11 }
 0x1f3   :  { %v1954_v37 = vmul.f32 %v6876_v54, %v1536_v30  ;;  %v1942_v58 = vmul.f32 %v6906_v6, %v1637_v53  ;;  %v1640_v47 = vpop.f32.mrb[12].mxu1  ;;  %v1729_v9 = vpop.f32.mrb[12].mxu0 }
 0x1f4   :  { %v6954_v59 = vpack.c.bf16 %v1953_v38, %v1946_v45  ;;  %v6956_v16 = vpack.c.bf16 %v1941_v15, %v1934_v57  ;;  %v1642_v41 = vpop.f32.mrb[13].mxu1  ;;  %v1731_v31 = vpop.f32.mrb[13].mxu0  ;;  %v1641_v25 = vadd.f32 %v1640_v47, %v6853_v24  ;;  %v1730_v54 = vadd.f32 %v1729_v9, %v6847_v43  ;;  %v6997_v38 = vld [vmem:[%s7637_s4] sm:$0x7] }
 0x1f5   :  { %v6958_v21 = vpack.c.bf16 %v1954_v37, %v1947_v40  ;;  %v6960_v28 = vpack.c.bf16 %v1942_v58, %v1935_v52  ;;  %v1643_v19 = vadd.f32 %v1642_v41, %v6853_v24  ;;  %v1732_v55 = vadd.f32 %v1731_v31, %v6847_v43 }
 0x1f6   :  { %v1948_v1 = vmul.f32 %v6898_v8, %v1641_v25  ;;  %v1922_v35 = vmul.f32 %v6965_v20, %v1730_v54  ;;  %v1909_v40 = vsub.s32 6, %v6218_v34 }
 0x1f7   :  { %v1646_v18 = vpop.f32.mrb[14].mxu1  ;;  %v1735_v5 = vpop.f32.mrb[14].mxu0  ;;  %5397 = vmatprep.subr.bf16.mxu1 %v6958_v21  ;;  %5409 = vmatprep.subr.bf16.mxu0 %v6960_v28  ;;  %v1949_v27 = vmul.f32 %v6906_v6, %v1643_v19  ;;  %v1923_v57 = vmul.f32 %v6970_v36, %v1732_v55 }
 0x1f8   :  { %v1647_v23 = vadd.f32 %v1646_v18, %v6855_v0  ;;  %v1736_v2 = vadd.f32 %v1735_v5, %v6845_v33  ;;  %v1648_v4 = vpop.f32.mrb[15].mxu1  ;;  %v1737_v3 = vpop.f32.mrb[15].mxu0  ;;  %5399 = vmatpush1.bf16.msra.mxu1 %v6954_v59  ;;  %5411 = vmatpush1.bf16.msra.mxu0 %v6956_v16  ;;  %v7019_v18 = vrot.slane %v6863_v26, %v1909_v40 }
 0x1f9   :  { %v1649_v61 = vadd.f32 %v1648_v4, %v6855_v0  ;;  %v1738_v50 = vadd.f32 %v1737_v3, %v6845_v33  ;;  %5401 = vmatprep.subr.bf16.mxu1 %v6902_v56 }
 0x1fa   :  { %v1955_v7 = vmul.f32 %v6898_v8, %v1647_v23  ;;  %v1929_v13 = vmul.f32 %v6965_v20, %v1736_v2 }
 0x1fb   :  { %v1956_v39 = vmul.f32 %v6906_v6, %v1649_v61  ;;  %v1930_v11 = vmul.f32 %v6970_v36, %v1738_v50  ;;  %v1652_v14 = vpop.f32.mrb[16].mxu1  ;;  %v1741_v48 = vpop.f32.mrb[16].mxu0 }
 0x1fc   :  { %v6989_v52 = vpack.c.bf16 %v1955_v7, %v1948_v1  ;;  %v6991_v30 = vpack.c.bf16 %v1929_v13, %v1922_v35  ;;  %v1654_v53 = vpop.f32.mrb[17].mxu1  ;;  %v1743_v45 = vpop.f32.mrb[17].mxu0  ;;  %5403 = vmatpush1.bf16.msra.mxu1 %v6894_v63  ;;  %v1653_v37 = vadd.f32 %v1652_v14, %v6857_v62  ;;  %v1742_v58 = vadd.f32 %v1741_v48, %v6849_v22 }
 0x1fd   :  { %v6999_v15 = vpack.c.bf16 %v1956_v39, %v1949_v27  ;;  %v7001_v44 = vpack.c.bf16 %v1930_v11, %v1923_v57  ;;  %v1655_v47 = vadd.f32 %v1654_v53, %v6857_v62  ;;  %v1744_v9 = vadd.f32 %v1743_v45, %v6849_v22 }
 0x1fe   :  { %v1962_v5 = vmul.f32 %v6898_v8, %v1653_v37  ;;  %v1936_v23 = vmul.f32 %v6965_v20, %v1742_v58 }
 0x1ff   :  { %v1658_v12 = vpop.f32.mrb[18].mxu1  ;;  %v1747_v41 = vpop.f32.mrb[18].mxu0  ;;  %5028 = vmatmul.mubr.msk.f32.vlgmr.msra.gmra.mrb[28].mxu1 %vm1984_vm12, %v6997_v38  ;;  %5413 = vmatprep.subr.bf16.mxu0 %v6999_v15  ;;  %v1963_v3 = vmul.f32 %v6906_v6, %v1655_v47  ;;  %v1937_v61 = vmul.f32 %v6970_v36, %v1744_v9 }
 0x200   :  { %v1659_v31 = vadd.f32 %v1658_v12, %v6868_v49  ;;  %v1748_v25 = vadd.f32 %v1747_v41, %v6851_v29  ;;  %5421 = vmatprep.subr.bf16.mxu1 %v7001_v44  ;;  %v1660_v34 = vpop.f32.mrb[19].mxu1  ;;  %v1749_v54 = vpop.f32.mrb[19].mxu0  ;;  %5415 = vmatpush1.bf16.msra.mxu0 %v6989_v52 }
 0x201   :  { %v1661_v19 = vadd.f32 %v1660_v34, %v6868_v49  ;;  %v1750_v55 = vadd.f32 %v1749_v54, %v6851_v29  ;;  %5423 = vmatpush1.bf16.msra.mxu1 %v6991_v30  ;;  %2194 = vmatprep.mubr.f32.mxu1 %v6000_v17 }
 0x202   :  { %v1969_v2 = vmul.f32 %v6898_v8, %v1659_v31  ;;  %v1943_v4 = vmul.f32 %v6965_v20, %v1748_v25  ;;  %v6004_v31 = vmov 0.0|0.0  }
 0x203   :  { %v1970_v50 = vmul.f32 %v6906_v6, %v1661_v19  ;;  %v1944_v1 = vmul.f32 %v6970_v36, %v1750_v55  ;;  %v1753_v26 = vpop.f32.mrb[20].mxu0  ;;  %v5167_v35 = vpop.f32.mrb[20].mxu1 }
 0x204   :  { %v7030_v7 = vpack.c.bf16 %v1969_v2, %v1962_v5  ;;  %v7032_v13 = vpack.c.bf16 %v1943_v4, %v1936_v23  ;;  %v1848_v27 = vadd.f32 %v5167_v35, %v6845_v33  ;;  %v1755_v57 = vpop.f32.mrb[21].mxu0  ;;  %v1842_v8 = vpop.f32.mrb[21].mxu1  ;;  %v1754_v6 = vadd.f32 %v1753_v26, %v6853_v24 }
 0x205   :  { %v7035_v39 = vpack.c.bf16 %v1970_v50, %v1963_v3  ;;  %v7037_v11 = vpack.c.bf16 %v1944_v1, %v1937_v61  ;;  %v1843_v14 = vadd.f32 %v1842_v8, %v6847_v43  ;;  %v1756_v53 = vadd.f32 %v1755_v57, %v6853_v24 }
 0x206   :  { %v1931_v48 = vmul.f32 %v7019_v18, %v1848_v27  ;;  %v1950_v25 = vmul.f32 %v6965_v20, %v1754_v6 }
 0x207   :  { %v1924_v45 = vmul.f32 %v7019_v18, %v1843_v14  ;;  %v1759_v40 = vpop.f32.mrb[22].mxu0  ;;  %v5170_v37 = vpop.f32.mrb[22].mxu1  ;;  %5417 = vmatprep.subr.bf16.mxu0 %v7035_v39  ;;  %5425 = vmatprep.subr.bf16.mxu1 %v7037_v11  ;;  %v1951_v54 = vmul.f32 %v6970_v36, %v1756_v53 }
 0x208   :  { %v1760_v33 = vadd.f32 %v1759_v40, %v6855_v0  ;;  %v1858_v58 = vadd.f32 %v5170_v37, %v6851_v29  ;;  %v1761_v47 = vpop.f32.mrb[23].mxu0  ;;  %v1852_v43 = vpop.f32.mrb[23].mxu1  ;;  %5419 = vmatpush1.bf16.msra.mxu0 %v7030_v7  ;;  %5427 = vmatpush1.bf16.msra.mxu1 %v7032_v13 }
 0x209   :  { %v7050_v9 = vpack.c.bf16 %v1931_v48, %v1924_v45  ;;  %v1762_v12 = vadd.f32 %v1761_v47, %v6855_v0  ;;  %v1853_v41 = vadd.f32 %v1852_v43, %v6849_v22  ;;  %5436 = vmatprep.subr.bf16.mxu0 %v6004_v31 }
 0x20a   :  { %v1957_v34 = vmul.f32 %v6965_v20, %v1760_v33  ;;  %v1945_v29 = vmul.f32 %v7019_v18, %v1858_v58 }
 0x20b   :  { %v1958_v19 = vmul.f32 %v6970_v36, %v1762_v12  ;;  %v1938_v55 = vmul.f32 %v7019_v18, %v1853_v41  ;;  %v1765_v5 = vpop.f32.mrb[24].mxu0  ;;  %v5173_v23 = vpop.f32.mrb[24].mxu1  ;;  %5029 = vmatmul.mubr.msk.f32.vlgmr.msra.gmra.mrb[28].mxu0 %vm1984_vm12, %v6997_v38 }
 0x20c   :  { %v7063_v22 = vpack.c.bf16 %v1957_v34, %v1950_v25  ;;  %v1868_v2 = vadd.f32 %v5173_v23, %v6855_v0  ;;  %v1767_v4 = vpop.f32.mrb[25].mxu0  ;;  %v1862_v3 = vpop.f32.mrb[25].mxu1  ;;  %5438 = vmatpush3.bf16.msra.mxu0 %v7050_v9  ;;  %5193 = vmatprep.mubr.msk.f32.mxu0 %vm6005_vm13, %v6000_v17  ;;  %v1766_v26 = vadd.f32 %v1765_v5, %v6857_v62  ;;  %v1979_v25 = vld [vmem:[%s7637_s4 + $0x14] sm:$0x7]  ;;  %v1980_v34 = vld [vmem:[%s7637_s4 + $0x18] sm:$0x7] }
 0x20d   :  { %v7069_v61 = vpack.c.bf16 %v1958_v19, %v1951_v54  ;;  %v7071_v50 = vpack.c.bf16 %v1945_v29, %v1938_v55  ;;  %v1863_v1 = vadd.f32 %v1862_v3, %v6853_v24  ;;  %5439 = vmatprep.subr.bf16.mxu0 %v6004_v31  ;;  %v1768_v35 = vadd.f32 %v1767_v4, %v6857_v62  ;;  %v1981_v5 = vld [vmem:[%s7637_s4 + $0x1c] sm:$0x7] }
 0x20e   :  { %v1959_v0 = vmul.f32 %v7019_v18, %v1868_v2  ;;  %v1964_v37 = vmul.f32 %v6965_v20, %v1766_v26 }
 0x20f   :  { %v1952_v27 = vmul.f32 %v7019_v18, %v1863_v1  ;;  %v1771_v57 = vpop.f32.mrb[26].mxu0  ;;  %v5176_v8 = vpop.f32.mrb[26].mxu1  ;;  %5429 = vmatprep.subr.bf16.mxu1 %v7069_v61  ;;  %v1965_v47 = vmul.f32 %v6970_v36, %v1768_v35 }
 0x210   :  { %v1772_v14 = vadd.f32 %v1771_v57, %v6868_v49  ;;  %v1878_v6 = vadd.f32 %v5176_v8, %v6868_v49  ;;  %v1773_v48 = vpop.f32.mrb[27].mxu0  ;;  %v1872_v24 = vpop.f32.mrb[27].mxu1  ;;  %5431 = vmatpush1.bf16.msra.mxu1 %v7063_v22  ;;  %5441 = vmatpush3.bf16.msra.mxu0 %v7071_v50 }
 0x211   :  { %v7084_v53 = vpack.c.bf16 %v1959_v0, %v1952_v27  ;;  %v1774_v45 = vadd.f32 %v1773_v48, %v6868_v49  ;;  %v1873_v40 = vadd.f32 %v1872_v24, %v6857_v62  ;;  %5442 = vmatprep.subr.bf16.mxu0 %v6004_v31 }
 0x212   :  { %v1971_v33 = vmul.f32 %v6965_v20, %v1772_v14  ;;  %v1973_v58 = vmul.f32 %v7019_v18, %v1878_v6  ;;  %v1975_v20 = vld [vmem:[%s7637_s4 + $0x4] sm:$0x7] }
 0x213   :  { %v1972_v43 = vmul.f32 %v6970_v36, %v1774_v45  ;;  %v1966_v12 = vmul.f32 %v7019_v18, %v1873_v40  ;;  %v1976_v36 = vld [vmem:[%s7637_s4 + $0x8] sm:$0x7]  ;;  %v1978_v18 = vld [vmem:[%s7637_s4 + $0x10] sm:$0x7] }
 0x214   :  { %v7095_v41 = vpack.c.bf16 %v1971_v33, %v1964_v37  ;;  %5444 = vmatpush3.bf16.msra.mxu0 %v7084_v53 }
 0x215   :  { %v7098_v49 = vpack.c.bf16 %v1972_v43, %v1965_v47  ;;  %v7100_v62 = vpack.c.bf16 %v1973_v58, %v1966_v12  ;;  %5445 = vmatprep.subr.bf16.mxu0 %v6004_v31 }
 0x217   :  { %5433 = vmatprep.subr.bf16.mxu1 %v7098_v49 }
 0x218   :  { %5435 = vmatpush1.bf16.msra.mxu1 %v7095_v41  ;;  %5447 = vmatpush3.bf16.msra.mxu0 %v7100_v62 }
 0x219   :  { %5449 = vmatprep.subr.bf16.mxu1 %v6900_v32  ;;  %5465 = vmatprep.subr.bf16.mxu0 %v6931_v60 }
 0x21b   :  { %5030 = vmatmul.mubr.msk.f32.vlgmr.msra.gmra.mrb[30].mxu1 %vm1984_vm12, %v6997_v38  ;;  %5194 = vmatmul.mubr.msk.f32.vlgmr.msra.gmra.mrb[30].mxu0 %vm1984_vm12, %v6997_v38  ;;  %v1977_v38 = vld [vmem:[%s7637_s4 + $0xc] sm:$0x7] }
 0x21c   :  { %5451 = vmatpush1.bf16.msra.mxu1 %v6892_v10  ;;  %5467 = vmatpush1.bf16.msra.mxu0 %v6926_v42 }
 0x21d   :  { %5453 = vmatprep.subr.bf16.mxu1 %v6929_v51  ;;  %5469 = vmatprep.subr.bf16.mxu0 %v6960_v28 }
 0x21e   :  { %2388 = vmatprep.mubr.f32.mxu1 %v6000_v17  ;;  %2459 = vmatprep.mubr.f32.mxu0 %v6000_v17 }
 0x220   :  { %5455 = vmatpush1.bf16.msra.mxu1 %v6924_v46  ;;  %5471 = vmatpush1.bf16.msra.mxu0 %v6956_v16 }
 0x221   :  { %5457 = vmatprep.subr.bf16.mxu1 %v6958_v21  ;;  %5473 = vmatprep.subr.bf16.mxu0 %v6999_v15 }
 0x224   :  { %5459 = vmatpush1.bf16.msra.mxu1 %v6954_v59  ;;  %5475 = vmatpush1.bf16.msra.mxu0 %v6989_v52 }
 0x225   :  { %5461 = vmatprep.subr.bf16.mxu1 %v6902_v56  ;;  %5477 = vmatprep.subr.bf16.mxu0 %v7035_v39 }
 0x228   :  { %5463 = vmatpush1.bf16.msra.mxu1 %v6894_v63  ;;  %5479 = vmatpush1.bf16.msra.mxu0 %v7030_v7 }
 0x229   :  { %5481 = vmatprep.subr.bf16.mxu1 %v7001_v44  ;;  %5496 = vmatprep.subr.bf16.mxu0 %v6004_v31 }
 0x22b   :  { %5032 = vmatmul.mubr.msk.f32.vlgmr.msra.gmra.mrb[32].mxu1 %vm1984_vm12, %v1975_v20  ;;  %5033 = vmatmul.mubr.msk.f32.vlgmr.msra.gmra.mrb[32].mxu0 %vm1984_vm12, %v1975_v20 }
 0x22c   :  { %5483 = vmatpush1.bf16.msra.mxu1 %v6991_v30  ;;  %5498 = vmatpush3.bf16.msra.mxu0 %v7050_v9 }
 0x22d   :  { %5485 = vmatprep.subr.bf16.mxu1 %v7037_v11  ;;  %5499 = vmatprep.subr.bf16.mxu0 %v6004_v31 }
 0x22e   :  { %2530 = vmatprep.mubr.f32.mxu1 %v6000_v17  ;;  %5212 = vmatprep.mubr.msk.f32.mxu0 %vm6005_vm13, %v6000_v17 }
 0x230   :  { %5487 = vmatpush1.bf16.msra.mxu1 %v7032_v13  ;;  %5501 = vmatpush3.bf16.msra.mxu0 %v7071_v50 }
 0x231   :  { %5489 = vmatprep.subr.bf16.mxu1 %v7069_v61  ;;  %5502 = vmatprep.subr.bf16.mxu0 %v6004_v31 }
 0x234   :  { %5491 = vmatpush1.bf16.msra.mxu1 %v7063_v22  ;;  %5504 = vmatpush3.bf16.msra.mxu0 %v7084_v53 }
 0x235   :  { %5493 = vmatprep.subr.bf16.mxu1 %v7098_v49  ;;  %5505 = vmatprep.subr.bf16.mxu0 %v6004_v31 }
 0x238   :  { %5495 = vmatpush1.bf16.msra.mxu1 %v7095_v41  ;;  %5507 = vmatpush3.bf16.msra.mxu0 %v7100_v62 }
 0x239   :  { %5509 = vmatprep.subr.bf16.mxu1 %v6900_v32  ;;  %5525 = vmatprep.subr.bf16.mxu0 %v6931_v60 }
 0x23b   :  { %5034 = vmatmul.mubr.msk.f32.vlgmr.msra.gmra.mrb[34].mxu1 %vm1984_vm12, %v1975_v20  ;;  %5213 = vmatmul.mubr.msk.f32.vlgmr.msra.gmra.mrb[34].mxu0 %vm1984_vm12, %v1975_v20 }
 0x23c   :  { %5511 = vmatpush1.bf16.msra.mxu1 %v6892_v10  ;;  %5527 = vmatpush1.bf16.msra.mxu0 %v6926_v42 }
 0x23d   :  { %5513 = vmatprep.subr.bf16.mxu1 %v6929_v51  ;;  %5529 = vmatprep.subr.bf16.mxu0 %v6960_v28 }
 0x23e   :  { %2719 = vmatprep.mubr.f32.mxu1 %v6000_v17  ;;  %2790 = vmatprep.mubr.f32.mxu0 %v6000_v17 }
 0x240   :  { %5515 = vmatpush1.bf16.msra.mxu1 %v6924_v46  ;;  %5531 = vmatpush1.bf16.msra.mxu0 %v6956_v16 }
 0x241   :  { %5517 = vmatprep.subr.bf16.mxu1 %v6958_v21  ;;  %5533 = vmatprep.subr.bf16.mxu0 %v6999_v15 }
 0x244   :  { %5519 = vmatpush1.bf16.msra.mxu1 %v6954_v59  ;;  %5535 = vmatpush1.bf16.msra.mxu0 %v6989_v52 }
 0x245   :  { %5521 = vmatprep.subr.bf16.mxu1 %v6902_v56  ;;  %5537 = vmatprep.subr.bf16.mxu0 %v7035_v39 }
 0x248   :  { %5523 = vmatpush1.bf16.msra.mxu1 %v6894_v63  ;;  %5539 = vmatpush1.bf16.msra.mxu0 %v7030_v7 }
 0x249   :  { %5541 = vmatprep.subr.bf16.mxu1 %v7001_v44  ;;  %5556 = vmatprep.subr.bf16.mxu0 %v6004_v31 }
 0x24b   :  { %5036 = vmatmul.mubr.msk.f32.vlgmr.msra.gmra.mrb[36].mxu1 %vm1984_vm12, %v1976_v36  ;;  %5037 = vmatmul.mubr.msk.f32.vlgmr.msra.gmra.mrb[36].mxu0 %vm1984_vm12, %v1976_v36 }
 0x24c   :  { %5543 = vmatpush1.bf16.msra.mxu1 %v6991_v30  ;;  %5558 = vmatpush3.bf16.msra.mxu0 %v7050_v9 }
 0x24d   :  { %5545 = vmatprep.subr.bf16.mxu1 %v7037_v11  ;;  %5559 = vmatprep.subr.bf16.mxu0 %v6004_v31 }
 0x24e   :  { %2861 = vmatprep.mubr.f32.mxu1 %v6000_v17  ;;  %5231 = vmatprep.mubr.msk.f32.mxu0 %vm6005_vm13, %v6000_v17 }
 0x250   :  { %5547 = vmatpush1.bf16.msra.mxu1 %v7032_v13  ;;  %5561 = vmatpush3.bf16.msra.mxu0 %v7071_v50 }
 0x251   :  { %5549 = vmatprep.subr.bf16.mxu1 %v7069_v61  ;;  %5562 = vmatprep.subr.bf16.mxu0 %v6004_v31 }
 0x254   :  { %5551 = vmatpush1.bf16.msra.mxu1 %v7063_v22  ;;  %5564 = vmatpush3.bf16.msra.mxu0 %v7084_v53 }
 0x255   :  { %5553 = vmatprep.subr.bf16.mxu1 %v7098_v49  ;;  %5565 = vmatprep.subr.bf16.mxu0 %v6004_v31 }
 0x258   :  { %5555 = vmatpush1.bf16.msra.mxu1 %v7095_v41  ;;  %5567 = vmatpush3.bf16.msra.mxu0 %v7100_v62 }
 0x259   :  { %5569 = vmatprep.subr.bf16.mxu1 %v6900_v32  ;;  %5585 = vmatprep.subr.bf16.mxu0 %v6931_v60 }
 0x25b   :  { %5038 = vmatmul.mubr.msk.f32.vlgmr.msra.gmra.mrb[38].mxu1 %vm1984_vm12, %v1976_v36  ;;  %5232 = vmatmul.mubr.msk.f32.vlgmr.msra.gmra.mrb[38].mxu0 %vm1984_vm12, %v1976_v36 }
 0x25c   :  { %5571 = vmatpush1.bf16.msra.mxu1 %v6892_v10  ;;  %5587 = vmatpush1.bf16.msra.mxu0 %v6926_v42 }
 0x25d   :  { %5573 = vmatprep.subr.bf16.mxu1 %v6929_v51  ;;  %5589 = vmatprep.subr.bf16.mxu0 %v6960_v28 }
 0x25e   :  { %3050 = vmatprep.mubr.f32.mxu1 %v6000_v17  ;;  %3121 = vmatprep.mubr.f32.mxu0 %v6000_v17 }
 0x260   :  { %5575 = vmatpush1.bf16.msra.mxu1 %v6924_v46  ;;  %5591 = vmatpush1.bf16.msra.mxu0 %v6956_v16 }
 0x261   :  { %5577 = vmatprep.subr.bf16.mxu1 %v6958_v21  ;;  %5593 = vmatprep.subr.bf16.mxu0 %v6999_v15 }
 0x264   :  { %5579 = vmatpush1.bf16.msra.mxu1 %v6954_v59  ;;  %5595 = vmatpush1.bf16.msra.mxu0 %v6989_v52 }
 0x265   :  { %5581 = vmatprep.subr.bf16.mxu1 %v6902_v56  ;;  %5597 = vmatprep.subr.bf16.mxu0 %v7035_v39 }
 0x268   :  { %5583 = vmatpush1.bf16.msra.mxu1 %v6894_v63  ;;  %5599 = vmatpush1.bf16.msra.mxu0 %v7030_v7 }
 0x269   :  { %5601 = vmatprep.subr.bf16.mxu1 %v7001_v44  ;;  %5616 = vmatprep.subr.bf16.mxu0 %v6004_v31 }
 0x26b   :  { %5040 = vmatmul.mubr.msk.f32.vlgmr.msra.gmra.mrb[40].mxu1 %vm1984_vm12, %v1977_v38  ;;  %5041 = vmatmul.mubr.msk.f32.vlgmr.msra.gmra.mrb[40].mxu0 %vm1984_vm12, %v1977_v38 }
 0x26c   :  { %5603 = vmatpush1.bf16.msra.mxu1 %v6991_v30  ;;  %5618 = vmatpush3.bf16.msra.mxu0 %v7050_v9 }
 0x26d   :  { %5605 = vmatprep.subr.bf16.mxu1 %v7037_v11  ;;  %5619 = vmatprep.subr.bf16.mxu0 %v6004_v31 }
 0x26e   :  { %3192 = vmatprep.mubr.f32.mxu1 %v6000_v17  ;;  %5250 = vmatprep.mubr.msk.f32.mxu0 %vm6005_vm13, %v6000_v17 }
 0x270   :  { %5607 = vmatpush1.bf16.msra.mxu1 %v7032_v13  ;;  %5621 = vmatpush3.bf16.msra.mxu0 %v7071_v50 }
 0x271   :  { %5609 = vmatprep.subr.bf16.mxu1 %v7069_v61  ;;  %5622 = vmatprep.subr.bf16.mxu0 %v6004_v31 }
 0x274   :  { %5611 = vmatpush1.bf16.msra.mxu1 %v7063_v22  ;;  %5624 = vmatpush3.bf16.msra.mxu0 %v7084_v53 }
 0x275   :  { %5613 = vmatprep.subr.bf16.mxu1 %v7098_v49  ;;  %5625 = vmatprep.subr.bf16.mxu0 %v6004_v31 }
 0x278   :  { %5615 = vmatpush1.bf16.msra.mxu1 %v7095_v41  ;;  %5627 = vmatpush3.bf16.msra.mxu0 %v7100_v62 }
 0x279   :  { %5629 = vmatprep.subr.bf16.mxu1 %v6900_v32  ;;  %5645 = vmatprep.subr.bf16.mxu0 %v6931_v60 }
 0x27b   :  { %5042 = vmatmul.mubr.msk.f32.vlgmr.msra.gmra.mrb[42].mxu1 %vm1984_vm12, %v1977_v38  ;;  %5251 = vmatmul.mubr.msk.f32.vlgmr.msra.gmra.mrb[42].mxu0 %vm1984_vm12, %v1977_v38 }
 0x27c   :  { %5631 = vmatpush1.bf16.msra.mxu1 %v6892_v10  ;;  %5647 = vmatpush1.bf16.msra.mxu0 %v6926_v42 }
 0x27d   :  { %5633 = vmatprep.subr.bf16.mxu1 %v6929_v51  ;;  %5649 = vmatprep.subr.bf16.mxu0 %v6960_v28 }
 0x27e   :  { %3381 = vmatprep.mubr.f32.mxu1 %v6000_v17  ;;  %3452 = vmatprep.mubr.f32.mxu0 %v6000_v17 }
 0x280   :  { %5635 = vmatpush1.bf16.msra.mxu1 %v6924_v46  ;;  %5651 = vmatpush1.bf16.msra.mxu0 %v6956_v16 }
 0x281   :  { %5637 = vmatprep.subr.bf16.mxu1 %v6958_v21  ;;  %5653 = vmatprep.subr.bf16.mxu0 %v6999_v15 }
 0x284   :  { %5639 = vmatpush1.bf16.msra.mxu1 %v6954_v59  ;;  %5655 = vmatpush1.bf16.msra.mxu0 %v6989_v52 }
 0x285   :  { %5641 = vmatprep.subr.bf16.mxu1 %v6902_v56  ;;  %5657 = vmatprep.subr.bf16.mxu0 %v7035_v39 }
 0x288   :  { %5643 = vmatpush1.bf16.msra.mxu1 %v6894_v63  ;;  %5659 = vmatpush1.bf16.msra.mxu0 %v7030_v7 }
 0x289   :  { %5661 = vmatprep.subr.bf16.mxu1 %v7001_v44  ;;  %5676 = vmatprep.subr.bf16.mxu0 %v6004_v31 }
 0x28b   :  { %5044 = vmatmul.mubr.msk.f32.vlgmr.msra.gmra.mrb[44].mxu1 %vm1984_vm12, %v1978_v18  ;;  %5045 = vmatmul.mubr.msk.f32.vlgmr.msra.gmra.mrb[44].mxu0 %vm1984_vm12, %v1978_v18 }
 0x28c   :  { %5663 = vmatpush1.bf16.msra.mxu1 %v6991_v30  ;;  %5678 = vmatpush3.bf16.msra.mxu0 %v7050_v9 }
 0x28d   :  { %5665 = vmatprep.subr.bf16.mxu1 %v7037_v11  ;;  %5679 = vmatprep.subr.bf16.mxu0 %v6004_v31 }
 0x28e   :  { %3523 = vmatprep.mubr.f32.mxu1 %v6000_v17  ;;  %5269 = vmatprep.mubr.msk.f32.mxu0 %vm6005_vm13, %v6000_v17 }
 0x290   :  { %5667 = vmatpush1.bf16.msra.mxu1 %v7032_v13  ;;  %5681 = vmatpush3.bf16.msra.mxu0 %v7071_v50 }
 0x291   :  { %5669 = vmatprep.subr.bf16.mxu1 %v7069_v61  ;;  %5682 = vmatprep.subr.bf16.mxu0 %v6004_v31 }
 0x294   :  { %5671 = vmatpush1.bf16.msra.mxu1 %v7063_v22  ;;  %5684 = vmatpush3.bf16.msra.mxu0 %v7084_v53 }
 0x295   :  { %5673 = vmatprep.subr.bf16.mxu1 %v7098_v49  ;;  %5685 = vmatprep.subr.bf16.mxu0 %v6004_v31 }
 0x298   :  { %5675 = vmatpush1.bf16.msra.mxu1 %v7095_v41  ;;  %5687 = vmatpush3.bf16.msra.mxu0 %v7100_v62 }
 0x299   :  { %5689 = vmatprep.subr.bf16.mxu1 %v6900_v32  ;;  %5705 = vmatprep.subr.bf16.mxu0 %v6931_v60 }
 0x29b   :  { %5046 = vmatmul.mubr.msk.f32.vlgmr.msra.gmra.mrb[46].mxu1 %vm1984_vm12, %v1978_v18  ;;  %5270 = vmatmul.mubr.msk.f32.vlgmr.msra.gmra.mrb[46].mxu0 %vm1984_vm12, %v1978_v18 }
 0x29c   :  { %5691 = vmatpush1.bf16.msra.mxu1 %v6892_v10  ;;  %5707 = vmatpush1.bf16.msra.mxu0 %v6926_v42 }
 0x29d   :  { %5693 = vmatprep.subr.bf16.mxu1 %v6929_v51  ;;  %5709 = vmatprep.subr.bf16.mxu0 %v6960_v28 }
 0x29e   :  { %3674 = vmatprep.mubr.f32.mxu1 %v6000_v17  ;;  %3745 = vmatprep.mubr.f32.mxu0 %v6000_v17 }
 0x2a0   :  { %5695 = vmatpush1.bf16.msra.mxu1 %v6924_v46  ;;  %5711 = vmatpush1.bf16.msra.mxu0 %v6956_v16 }
 0x2a1   :  { %5697 = vmatprep.subr.bf16.mxu1 %v6958_v21  ;;  %5713 = vmatprep.subr.bf16.mxu0 %v6999_v15 }
 0x2a4   :  { %5699 = vmatpush1.bf16.msra.mxu1 %v6954_v59  ;;  %5715 = vmatpush1.bf16.msra.mxu0 %v6989_v52 }
 0x2a5   :  { %5701 = vmatprep.subr.bf16.mxu1 %v6902_v56  ;;  %5717 = vmatprep.subr.bf16.mxu0 %v7035_v39 }
 0x2a8   :  { %5703 = vmatpush1.bf16.msra.mxu1 %v6894_v63  ;;  %5719 = vmatpush1.bf16.msra.mxu0 %v7030_v7 }
 0x2a9   :  { %5721 = vmatprep.subr.bf16.mxu1 %v7001_v44  ;;  %5736 = vmatprep.subr.bf16.mxu0 %v6004_v31 }
 0x2ab   :  { %5048 = vmatmul.mubr.msk.f32.vlgmr.msra.gmra.mrb[48].mxu1 %vm1984_vm12, %v1979_v25  ;;  %5049 = vmatmul.mubr.msk.f32.vlgmr.msra.gmra.mrb[48].mxu0 %vm1984_vm12, %v1979_v25 }
 0x2ac   :  { %5723 = vmatpush1.bf16.msra.mxu1 %v6991_v30  ;;  %5738 = vmatpush3.bf16.msra.mxu0 %v7050_v9 }
 0x2ad   :  { %5725 = vmatprep.subr.bf16.mxu1 %v7037_v11  ;;  %5739 = vmatprep.subr.bf16.mxu0 %v6004_v31 }
 0x2ae   :  { %3816 = vmatprep.mubr.f32.mxu1 %v6000_v17  ;;  %5288 = vmatprep.mubr.msk.f32.mxu0 %vm6005_vm13, %v6000_v17 }
 0x2b0   :  { %5727 = vmatpush1.bf16.msra.mxu1 %v7032_v13  ;;  %5741 = vmatpush3.bf16.msra.mxu0 %v7071_v50 }
 0x2b1   :  { %5729 = vmatprep.subr.bf16.mxu1 %v7069_v61  ;;  %5742 = vmatprep.subr.bf16.mxu0 %v6004_v31 }
 0x2b4   :  { %5731 = vmatpush1.bf16.msra.mxu1 %v7063_v22  ;;  %5744 = vmatpush3.bf16.msra.mxu0 %v7084_v53 }
 0x2b5   :  { %5733 = vmatprep.subr.bf16.mxu1 %v7098_v49  ;;  %5745 = vmatprep.subr.bf16.mxu0 %v6004_v31 }
 0x2b8   :  { %5735 = vmatpush1.bf16.msra.mxu1 %v7095_v41  ;;  %5747 = vmatpush3.bf16.msra.mxu0 %v7100_v62 }
 0x2b9   :  { %5749 = vmatprep.subr.bf16.mxu1 %v6900_v32  ;;  %5765 = vmatprep.subr.bf16.mxu0 %v6931_v60 }
 0x2bb   :  { %5050 = vmatmul.mubr.msk.f32.vlgmr.msra.gmra.mrb[50].mxu1 %vm1984_vm12, %v1979_v25  ;;  %5289 = vmatmul.mubr.msk.f32.vlgmr.msra.gmra.mrb[50].mxu0 %vm1984_vm12, %v1979_v25 }
 0x2bc   :  { %5751 = vmatpush1.bf16.msra.mxu1 %v6892_v10  ;;  %5767 = vmatpush1.bf16.msra.mxu0 %v6926_v42 }
 0x2bd   :  { %5753 = vmatprep.subr.bf16.mxu1 %v6929_v51  ;;  %5769 = vmatprep.subr.bf16.mxu0 %v6960_v28 }
 0x2be   :  { %4005 = vmatprep.mubr.f32.mxu1 %v6000_v17  ;;  %4076 = vmatprep.mubr.f32.mxu0 %v6000_v17 }
 0x2c0   :  { %5755 = vmatpush1.bf16.msra.mxu1 %v6924_v46  ;;  %5771 = vmatpush1.bf16.msra.mxu0 %v6956_v16 }
 0x2c1   :  { %5757 = vmatprep.subr.bf16.mxu1 %v6958_v21  ;;  %5773 = vmatprep.subr.bf16.mxu0 %v6999_v15 }
 0x2c4   :  { %5759 = vmatpush1.bf16.msra.mxu1 %v6954_v59  ;;  %5775 = vmatpush1.bf16.msra.mxu0 %v6989_v52 }
 0x2c5   :  { %5761 = vmatprep.subr.bf16.mxu1 %v6902_v56  ;;  %5777 = vmatprep.subr.bf16.mxu0 %v7035_v39 }
 0x2c8   :  { %5763 = vmatpush1.bf16.msra.mxu1 %v6894_v63  ;;  %5779 = vmatpush1.bf16.msra.mxu0 %v7030_v7 }
 0x2c9   :  { %5781 = vmatprep.subr.bf16.mxu1 %v7001_v44  ;;  %5796 = vmatprep.subr.bf16.mxu0 %v6004_v31 }
 0x2cb   :  { %5052 = vmatmul.mubr.msk.f32.vlgmr.msra.gmra.mrb[52].mxu1 %vm1984_vm12, %v1980_v34  ;;  %5053 = vmatmul.mubr.msk.f32.vlgmr.msra.gmra.mrb[52].mxu0 %vm1984_vm12, %v1980_v34 }
 0x2cc   :  { %5783 = vmatpush1.bf16.msra.mxu1 %v6991_v30  ;;  %5798 = vmatpush3.bf16.msra.mxu0 %v7050_v9 }
 0x2cd   :  { %5785 = vmatprep.subr.bf16.mxu1 %v7037_v11  ;;  %5799 = vmatprep.subr.bf16.mxu0 %v6004_v31 }
 0x2ce   :  { %4147 = vmatprep.mubr.f32.mxu1 %v6000_v17  ;;  %5307 = vmatprep.mubr.msk.f32.mxu0 %vm6005_vm13, %v6000_v17 }
 0x2d0   :  { %5787 = vmatpush1.bf16.msra.mxu1 %v7032_v13  ;;  %5801 = vmatpush3.bf16.msra.mxu0 %v7071_v50 }
 0x2d1   :  { %5789 = vmatprep.subr.bf16.mxu1 %v7069_v61  ;;  %5802 = vmatprep.subr.bf16.mxu0 %v6004_v31 }
 0x2d2   :  { %v2054_v29 = vpop.f32.mrb[28].mxu1 }
 0x2d3   :  { %v2056_v54 = vpop.f32.mrb[29].mxu1  ;;  %2281 = vrot.lane.b32.xlu0 %v2054_v29, %s5985_s28 }
 0x2d4   :  { %5791 = vmatpush1.bf16.msra.mxu1 %v7063_v22  ;;  %5804 = vmatpush3.bf16.msra.mxu0 %v7084_v53 }
 0x2d5   :  { %2283 = vrot.lane.b32.xlu1 %v2056_v54, %s5985_s28  ;;  %5793 = vmatprep.subr.bf16.mxu1 %v7098_v49 }
 0x2d6   :  { %5805 = vmatprep.subr.bf16.mxu0 %v6004_v31 }
 0x2d8   :  { %5795 = vmatpush1.bf16.msra.mxu1 %v7095_v41  ;;  %5807 = vmatpush3.bf16.msra.mxu0 %v7100_v62 }
 0x2d9   :  { %5809 = vmatprep.subr.bf16.mxu1 %v6900_v32  ;;  %5825 = vmatprep.subr.bf16.mxu0 %v6931_v60 }
 0x2db   :  { %5054 = vmatmul.mubr.msk.f32.vlgmr.msra.gmra.mrb[54].mxu1 %vm1984_vm12, %v1980_v34  ;;  %5308 = vmatmul.mubr.msk.f32.vlgmr.msra.gmra.mrb[54].mxu0 %vm1984_vm12, %v1980_v34 }
 0x2dc   :  { %5811 = vmatpush1.bf16.msra.mxu1 %v6892_v10  ;;  %5827 = vmatpush1.bf16.msra.mxu0 %v6926_v42 }
 0x2dd   :  { %5813 = vmatprep.subr.bf16.mxu1 %v6929_v51  ;;  %5829 = vmatprep.subr.bf16.mxu0 %v6960_v28 }
 0x2de   :  { %v2125_v19 = vpop.f32.mrb[28].mxu0  ;;  %4336 = vmatprep.mubr.f32.mxu1 %v6000_v17  ;;  %4407 = vmatprep.mubr.f32.mxu0 %v6000_v17 }
 0x2df   :  { %v2127_v55 = vpop.f32.mrb[29].mxu0  ;;  %2285 = vrot.lane.b32.xlu0 %v2125_v19, %s5985_s28 }
 0x2e0   :  { %5815 = vmatpush1.bf16.msra.mxu1 %v6924_v46  ;;  %5831 = vmatpush1.bf16.msra.mxu0 %v6956_v16 }
 0x2e1   :  { %2287 = vrot.lane.b32.xlu1 %v2127_v55, %s5985_s28  ;;  %5817 = vmatprep.subr.bf16.mxu1 %v6958_v21 }
 0x2e2   :  { %5833 = vmatprep.subr.bf16.mxu0 %v6999_v15 }
 0x2e4   :  { %5819 = vmatpush1.bf16.msra.mxu1 %v6954_v59  ;;  %5835 = vmatpush1.bf16.msra.mxu0 %v6989_v52 }
 0x2e5   :  { %5821 = vmatprep.subr.bf16.mxu1 %v6902_v56  ;;  %5837 = vmatprep.subr.bf16.mxu0 %v7035_v39 }
 0x2e8   :  { %5823 = vmatpush1.bf16.msra.mxu1 %v6894_v63  ;;  %5839 = vmatpush1.bf16.msra.mxu0 %v7030_v7 }
 0x2e9   :  { %5841 = vmatprep.subr.bf16.mxu1 %v7001_v44  ;;  %5856 = vmatprep.subr.bf16.mxu0 %v6004_v31 }
 0x2eb   :  { %5056 = vmatmul.mubr.msk.f32.vlgmr.msra.gmra.mrb[56].mxu1 %vm1984_vm12, %v1981_v5  ;;  %5057 = vmatmul.mubr.msk.f32.vlgmr.msra.gmra.mrb[56].mxu0 %vm1984_vm12, %v1981_v5 }
 0x2ec   :  { %5843 = vmatpush1.bf16.msra.mxu1 %v6991_v30  ;;  %5858 = vmatpush3.bf16.msra.mxu0 %v7050_v9 }
 0x2ed   :  { %5845 = vmatprep.subr.bf16.mxu1 %v7037_v11  ;;  %5859 = vmatprep.subr.bf16.mxu0 %v6004_v31 }
 0x2ee   :  { %v2196_v23 = vpop.f32.mrb[30].mxu1  ;;  %v2267_v2 = vpop.f32.mrb[30].mxu0  ;;  %4478 = vmatprep.mubr.f32.mxu1 %v6000_v17  ;;  %5326 = vmatprep.mubr.msk.f32.mxu0 %vm6005_vm13, %v6000_v17 }
 0x2ef   :  { %2272 = vrot.lane.b32.xlu1 %v2267_v2, %s5984_s25  ;;  %2289 = vrot.lane.b32.xlu0 %v2196_v23, %s5985_s28  ;;  %v2198_v4 = vpop.f32.mrb[31].mxu1  ;;  %v5195_v3 = vpop.f32.mrb[31].mxu0 }
 0x2f0   :  { %5847 = vmatpush1.bf16.msra.mxu1 %v7032_v13  ;;  %5861 = vmatpush3.bf16.msra.mxu0 %v7071_v50 }
 0x2f1   :  { %5849 = vmatprep.subr.bf16.mxu1 %v7069_v61  ;;  %5862 = vmatprep.subr.bf16.mxu0 %v6004_v31 }
 0x2f3   :  { %2293 = vrot.lane.b32.xlu0 %v2267_v2, %s5985_s28  ;;  %2291 = vrot.lane.b32.xlu1 %v2198_v4, %s5985_s28 }
 0x2f4   :  { %5851 = vmatpush1.bf16.msra.mxu1 %v7063_v22  ;;  %5864 = vmatpush3.bf16.msra.mxu0 %v7084_v53 }
 0x2f5   :  { %5853 = vmatprep.subr.bf16.mxu1 %v7098_v49  ;;  %5865 = vmatprep.subr.bf16.mxu0 %v6004_v31 }
 0x2f8   :  { %5855 = vmatpush1.bf16.msra.mxu1 %v7095_v41  ;;  %5867 = vmatpush3.bf16.msra.mxu0 %v7100_v62 }
 0x2f9   :  { %5869 = vmatprep.subr.bf16.mxu1 %v6900_v32  ;;  %5885 = vmatprep.subr.bf16.mxu0 %v6931_v60 }
 0x2fb   :  { %5058 = vmatmul.mubr.msk.f32.vlgmr.msra.gmra.mrb[58].mxu1 %vm1984_vm12, %v1981_v5  ;;  %5327 = vmatmul.mubr.msk.f32.vlgmr.msra.gmra.mrb[58].mxu0 %vm1984_vm12, %v1981_v5 }
 0x2fc   :  { %5871 = vmatpush1.bf16.msra.mxu1 %v6892_v10  ;;  %5887 = vmatpush1.bf16.msra.mxu0 %v6926_v42  ;;  %v1982_v10 = vld [vmem:[%s7637_s4 + $0x20] sm:$0x7]  ;;  %s6006_s4 = smov [#allocation2]  }
 0x2fd   :  { %5873 = vmatprep.subr.bf16.mxu1 %v6929_v51  ;;  %5889 = vmatprep.subr.bf16.mxu0 %v6960_v28 }
 0x2fe   :  { %v2390_v1 = vpop.f32.mrb[32].mxu1  ;;  %v2461_v26 = vpop.f32.mrb[32].mxu0  ;;  %4667 = vmatprep.mubr.f32.mxu1 %v6000_v17  ;;  %4738 = vmatprep.mubr.f32.mxu0 %v6000_v17 }
 0x2ff   :  { %2617 = vrot.lane.b32.xlu1 %v2390_v1, %s5987_s0  ;;  %v2392_v32 = vpop.f32.mrb[33].mxu1  ;;  %v2463_v60 = vpop.f32.mrb[33].mxu0 }
 0x300   :  { %5875 = vmatpush1.bf16.msra.mxu1 %v6924_v46  ;;  %5891 = vmatpush1.bf16.msra.mxu0 %v6956_v16 }
 0x301   :  { %2619 = vrot.lane.b32.xlu0 %v2392_v32, %s5987_s0  ;;  %5877 = vmatprep.subr.bf16.mxu1 %v6958_v21 }
 0x302   :  { %5893 = vmatprep.subr.bf16.mxu0 %v6999_v15 }
 0x303   :  { %2621 = vrot.lane.b32.xlu1 %v2461_v26, %s5987_s0 }
 0x304   :  { %5879 = vmatpush1.bf16.msra.mxu1 %v6954_v59  ;;  %5895 = vmatpush1.bf16.msra.mxu0 %v6989_v52 }
 0x305   :  { %2623 = vrot.lane.b32.xlu0 %v2463_v60, %s5987_s0  ;;  %5881 = vmatprep.subr.bf16.mxu1 %v6902_v56 }
 0x306   :  { %5897 = vmatprep.subr.bf16.mxu0 %v7035_v39  ;;  %v2312_v39 = vpop.permute.xlu1 %2311 }
 0x308   :  { %5883 = vmatpush1.bf16.msra.mxu1 %v6894_v63  ;;  %5899 = vmatpush1.bf16.msra.mxu0 %v7030_v7 }
 0x309   :  { %5901 = vmatprep.subr.bf16.mxu1 %v7001_v44  ;;  %5916 = vmatprep.subr.bf16.mxu0 %v6004_v31 }
 0x30b   :  { %5060 = vmatmul.mubr.msk.f32.vlgmr.msra.gmra.mrb[60].mxu1 %vm1984_vm12, %v1982_v10  ;;  %5061 = vmatmul.mubr.msk.f32.vlgmr.msra.gmra.mrb[60].mxu0 %vm1984_vm12, %v1982_v10 }
 0x30c   :  { %5903 = vmatpush1.bf16.msra.mxu1 %v6991_v30  ;;  %5918 = vmatpush3.bf16.msra.mxu0 %v7050_v9 }
 0x30d   :  { %5905 = vmatprep.subr.bf16.mxu1 %v7037_v11  ;;  %5919 = vmatprep.subr.bf16.mxu0 %v6004_v31 }
 0x30e   :  { %v2532_v63 = vpop.f32.mrb[34].mxu1  ;;  %v2603_v56 = vpop.f32.mrb[34].mxu0  ;;  %4809 = vmatprep.mubr.f32.mxu1 %v6000_v17  ;;  %5345 = vmatprep.mubr.msk.f32.mxu0 %vm6005_vm13, %v6000_v17 }
 0x30f   :  { %2608 = vrot.lane.b32.xlu0 %v2603_v56, %s5986_s7  ;;  %2625 = vrot.lane.b32.xlu1 %v2532_v63, %s5987_s0  ;;  %v2534_v46 = vpop.f32.mrb[35].mxu1  ;;  %v5214_v42 = vpop.f32.mrb[35].mxu0  ;;  %s4954_s7 = sshll.u32 %s6006_s4, 4  ;;  %s4955_s7 = int_to_ptr.vmem [resolvable:$true] %s4954_s7 }
 0x310   :  { %5907 = vmatpush1.bf16.msra.mxu1 %v7032_v13  ;;  %5921 = vmatpush3.bf16.msra.mxu0 %v7071_v50  ;;  %p5965_p1 = scmp.lt.s32.totalorder %s4955_s7, %s4955_s7 }
 0x311   :  { %5909 = vmatprep.subr.bf16.mxu1 %v7069_v61  ;;  %5922 = vmatprep.subr.bf16.mxu0 %v6004_v31 }
 0x313   :  { %2629 = vrot.lane.b32.xlu1 %v2603_v56, %s5987_s0  ;;  %2627 = vrot.lane.b32.xlu0 %v2534_v46, %s5987_s0  ;;  %s5960_s0 = scalar_lea.vmem %s4955_s7, 448 }
 0x314   :  { %5911 = vmatpush1.bf16.msra.mxu1 %v7063_v22  ;;  %5924 = vmatpush3.bf16.msra.mxu0 %v7084_v53  ;;  %p5961_p0 = scmp.ne.s32.totalorder %s4955_s7, %s5960_s0  ;;  %p5966_p2 = scmp.lt.s32.totalorder %s5960_s0, %s5960_s0 }
 0x315   :  { %5913 = vmatprep.subr.bf16.mxu1 %v7098_v49  ;;  %5925 = vmatprep.subr.bf16.mxu0 %v6004_v31 }
 0x316   :  { %p5967_p3 = por %p5966_p2, %p5965_p1 }
 0x318   :  { %5915 = vmatpush1.bf16.msra.mxu1 %v7095_v41  ;;  %5927 = vmatpush3.bf16.msra.mxu0 %v7100_v62  ;;  %p5968_p4 = pnand %p5967_p3, %p5961_p0 }
 0x31b   :  { %5062 = vmatmul.mubr.msk.f32.vlgmr.msra.gmra.mrb[62].mxu1 %vm1984_vm12, %v1982_v10  ;;  %5346 = vmatmul.mubr.msk.f32.vlgmr.msra.gmra.mrb[62].mxu0 %vm1984_vm12, %v1982_v10 }
 0x31e   :  { %v2721_v17 = vpop.f32.mrb[36].mxu1  ;;  %v2792_v51 = vpop.f32.mrb[36].mxu0 }
 0x31f   :  { %2948 = vrot.lane.b32.xlu1 %v2721_v17, %s5989_s9  ;;  %v2723_v59 = vpop.f32.mrb[37].mxu1  ;;  %v2794_v16 = vpop.f32.mrb[37].mxu0 }
 0x320   :  { %2950 = vrot.lane.b32.xlu0 %v2723_v59, %s5989_s9 }
 0x323   :  { %2952 = vrot.lane.b32.xlu1 %v2792_v51, %s5989_s9 }
 0x324   :  { %2954 = vrot.lane.b32.xlu0 %v2794_v16, %s5989_s9 }
 0x32e   :  { %v2863_v21 = vpop.f32.mrb[38].mxu1  ;;  %v2934_v28 = vpop.f32.mrb[38].mxu0 }
 0x32f   :  { %2939 = vrot.lane.b32.xlu0 %v2934_v28, %s5988_s8  ;;  %2956 = vrot.lane.b32.xlu1 %v2863_v21, %s5989_s9  ;;  %v2865_v52 = vpop.f32.mrb[39].mxu1  ;;  %v5233_v30 = vpop.f32.mrb[39].mxu0 }
 0x333   :  { %2960 = vrot.lane.b32.xlu1 %v2934_v28, %s5989_s9  ;;  %2958 = vrot.lane.b32.xlu0 %v2865_v52, %s5989_s9 }
 0x33e   :  { %v3052_v15 = vpop.f32.mrb[40].mxu1  ;;  %v3123_v44 = vpop.f32.mrb[40].mxu0 }
 0x33f   :  { %3279 = vrot.lane.b32.xlu1 %v3052_v15, %s5991_s11  ;;  %v3054_v7 = vpop.f32.mrb[41].mxu1  ;;  %v3125_v13 = vpop.f32.mrb[41].mxu0 }
 0x340   :  { %3281 = vrot.lane.b32.xlu0 %v3054_v7, %s5991_s11 }
 0x343   :  { %3283 = vrot.lane.b32.xlu1 %v3123_v44, %s5991_s11 }
 0x344   :  { %3285 = vrot.lane.b32.xlu0 %v3125_v13, %s5991_s11 }
 0x345   :  { %v2282_v11 = vpop.permute.xlu0 %2281 }
 0x347   :  { %v2284_v9 = vpop.permute.xlu1 %2283 }
 0x348   :  { %v2295_v31 = vsel %vm52_vm0, %v2282_v11, %v2284_v9 }
 0x349   :  { %v2315_v22 = vadd.f32 %v2312_v39, %v2295_v31 }
 0x34e   :  { %v3194_v61 = vpop.f32.mrb[42].mxu1  ;;  %v3265_v50 = vpop.f32.mrb[42].mxu0 }
 0x34f   :  { %3270 = vrot.lane.b32.xlu0 %v3265_v50, %s5990_s10  ;;  %3287 = vrot.lane.b32.xlu1 %v3194_v61, %s5991_s11  ;;  %v3196_v0 = vpop.f32.mrb[43].mxu1  ;;  %v5252_v35 = vpop.f32.mrb[43].mxu0 }
 0x351   :  { %v2286_v27 = vpop.permute.xlu0 %2285 }
 0x352   :  { %v2296_v57 = vsel %vm52_vm0, %v2284_v9, %v2286_v27 }
 0x353   :  { %v2316_v8 = vadd.f32 %v2312_v39, %v2296_v57  ;;  %v2288_v14 = vpop.permute.xlu1 %2287  ;;  %3291 = vrot.lane.b32.xlu1 %v3265_v50, %s5991_s11  ;;  %3289 = vrot.lane.b32.xlu0 %v3196_v0, %s5991_s11 }
 0x354   :  { %v2297_v6 = vsel %vm52_vm0, %v2286_v27, %v2288_v14 }
 0x355   :  { %v2317_v48 = vadd.f32 %v2312_v39, %v2297_v6 }
 0x35e   :  { %v7497_v24 = vpop.f32.mrb[44].mxu1  ;;  %v7499_v53 = vpop.f32.mrb[44].mxu0 }
 0x35f   :  { %v7501_v45 = vpop.f32.mrb[45].mxu1  ;;  %v7503_v40 = vpop.f32.mrb[45].mxu0 }
 0x361   :  { %v2273_v37 = vpop.permute.xlu1 %2272  ;;  %v2290_v33 = vpop.permute.xlu0 %2289 }
 0x362   :  { %v2308_v58 = vsel %vm52_vm0, %v2273_v37, %v2282_v11  ;;  %v2298_v47 = vsel %vm52_vm0, %v2288_v14, %v2290_v33 }
 0x363   :  { %v2314_v43 = vadd.f32 %v2312_v39, %v2308_v58  ;;  %v2318_v12 = vadd.f32 %v2312_v39, %v2298_v47 }
 0x365   :  { %v2294_v41 = vpop.permute.xlu0 %2293  ;;  %v2292_v49 = vpop.permute.xlu1 %2291 }
 0x366   :  { %v2299_v62 = vsel %vm52_vm0, %v2290_v33, %v2292_v49  ;;  %v2300_v20 = vsel %vm52_vm0, %v2292_v49, %v2294_v41  ;;  %vm4946_vm0 = vcmask 256000  }
 0x367   :  { %v2319_v36 = vadd.f32 %v2312_v39, %v2299_v62  ;;  %v2320_v38 = vadd.f32 %v2312_v39, %v2300_v20 }
 0x36e   :  { %v7509_v18 = vpop.f32.mrb[46].mxu1  ;;  %v7511_v25 = vpop.f32.mrb[46].mxu0 }
 0x36f   :  { %v7513_v34 = vpop.f32.mrb[47].mxu1  ;;  %v5271_v29 = vpop.f32.mrb[47].mxu0 }
 0x371   :  { %v2618_v54 = vpop.permute.xlu1 %2617 }
 0x373   :  { %v2620_v19 = vpop.permute.xlu0 %2619 }
 0x374   :  { %v2631_v55 = vsel %vm78_vm1, %v2618_v54, %v2620_v19 }
 0x375   :  { %v2646_v5 = vadd.f32 %v2631_v55, %v2315_v22  ;;  %v2622_v23 = vpop.permute.xlu1 %2621 }
 0x376   :  { %v2632_v2 = vsel %vm78_vm1, %v2620_v19, %v2622_v23 }
 0x377   :  { %v2647_v4 = vadd.f32 %v2632_v2, %v2316_v8  ;;  %v2624_v3 = vpop.permute.xlu0 %2623 }
 0x378   :  { %v2633_v1 = vsel %vm78_vm1, %v2622_v23, %v2624_v3 }
 0x379   :  { %v2648_v26 = vadd.f32 %v2633_v1, %v2317_v48 }
 0x37e   :  { %v3676_v32 = vpop.f32.mrb[48].mxu1  ;;  %v3747_v60 = vpop.f32.mrb[48].mxu0 }
 0x37f   :  { %3927 = vrot.lane.b32.xlu1 %v3676_v32, %s5995_s15  ;;  %3900 = vrot.lane.b32.xlu0 %v3676_v32, %s5992_s12  ;;  %v3678_v10 = vpop.f32.mrb[49].mxu1  ;;  %v3749_v63 = vpop.f32.mrb[49].mxu0 }
 0x381   :  { %v2609_v56 = vpop.permute.xlu0 %2608  ;;  %v2626_v46 = vpop.permute.xlu1 %2625 }
 0x382   :  { %v2644_v42 = vsel %vm78_vm1, %v2609_v56, %v2618_v54  ;;  %v2634_v17 = vsel %vm78_vm1, %v2624_v3, %v2626_v46 }
 0x383   :  { %v2645_v51 = vadd.f32 %v2644_v42, %v2314_v43  ;;  %v2649_v59 = vadd.f32 %v2634_v17, %v2318_v12  ;;  %3904 = vrot.lane.b32.xlu0 %v3747_v60, %s5992_s12  ;;  %3902 = vrot.lane.b32.xlu1 %v3678_v10, %s5992_s12 }
 0x385   :  { %v2630_v16 = vpop.permute.xlu1 %2629  ;;  %v2628_v21 = vpop.permute.xlu0 %2627 }
 0x386   :  { %v2635_v28 = vsel %vm78_vm1, %v2626_v46, %v2628_v21  ;;  %v2636_v52 = vsel %vm78_vm1, %v2628_v21, %v2630_v16 }
 0x387   :  { %v2650_v30 = vadd.f32 %v2635_v28, %v2319_v36  ;;  %v2651_v15 = vadd.f32 %v2636_v52, %v2320_v38  ;;  %3906 = vrot.lane.b32.xlu1 %v3749_v63, %s5992_s12 }
 0x38e   :  { %v3818_v44 = vpop.f32.mrb[50].mxu1  ;;  %v3889_v7 = vpop.f32.mrb[50].mxu0 }
 0x38f   :  { %3908 = vrot.lane.b32.xlu0 %v3818_v44, %s5992_s12  ;;  %v3820_v13 = vpop.f32.mrb[51].mxu1  ;;  %v5290_v39 = vpop.f32.mrb[51].mxu0 }
 0x390   :  { %3910 = vrot.lane.b32.xlu1 %v3820_v13, %s5992_s12 }
 0x391   :  { %v2949_v11 = vpop.permute.xlu1 %2948 }
 0x392   :  { %v2951_v9 = vpop.permute.xlu0 %2950 }
 0x393   :  { %v2962_v31 = vsel %vm104_vm2, %v2949_v11, %v2951_v9  ;;  %3912 = vrot.lane.b32.xlu0 %v3889_v7, %s5992_s12 }
 0x394   :  { %v2977_v22 = vadd.f32 %v2962_v31, %v2646_v5 }
 0x395   :  { %v2953_v61 = vpop.permute.xlu1 %2952 }
 0x396   :  { %v2963_v50 = vsel %vm104_vm2, %v2951_v9, %v2953_v61  ;;  %v2955_v0 = vpop.permute.xlu0 %2954 }
 0x397   :  { %v2978_v35 = vadd.f32 %v2963_v50, %v2647_v4  ;;  %v2964_v27 = vsel %vm104_vm2, %v2953_v61, %v2955_v0 }
 0x398   :  { %v2979_v57 = vadd.f32 %v2964_v27, %v2648_v26 }
 0x39e   :  { %v4007_v8 = vpop.f32.mrb[52].mxu1  ;;  %v4078_v14 = vpop.f32.mrb[52].mxu0 }
 0x39f   :  { %4258 = vrot.lane.b32.xlu1 %v4007_v8, %s5996_s16  ;;  %4231 = vrot.lane.b32.xlu0 %v4007_v8, %s5993_s13  ;;  %v4009_v6 = vpop.f32.mrb[53].mxu1  ;;  %v4080_v48 = vpop.f32.mrb[53].mxu0 }
 0x3a1   :  { %v2940_v37 = vpop.permute.xlu0 %2939  ;;  %v2957_v33 = vpop.permute.xlu1 %2956 }
 0x3a2   :  { %v2975_v58 = vsel %vm104_vm2, %v2940_v37, %v2949_v11  ;;  %v2965_v47 = vsel %vm104_vm2, %v2955_v0, %v2957_v33 }
 0x3a3   :  { %v2976_v43 = vadd.f32 %v2975_v58, %v2645_v51  ;;  %v2980_v12 = vadd.f32 %v2965_v47, %v2649_v59  ;;  %4235 = vrot.lane.b32.xlu0 %v4078_v14, %s5993_s13  ;;  %4233 = vrot.lane.b32.xlu1 %v4009_v6, %s5993_s13 }
 0x3a5   :  { %v2961_v41 = vpop.permute.xlu1 %2960  ;;  %v2959_v49 = vpop.permute.xlu0 %2958 }
 0x3a6   :  { %v2966_v62 = vsel %vm104_vm2, %v2957_v33, %v2959_v49  ;;  %v2967_v20 = vsel %vm104_vm2, %v2959_v49, %v2961_v41 }
 0x3a7   :  { %v2981_v36 = vadd.f32 %v2966_v62, %v2650_v30  ;;  %v2982_v38 = vadd.f32 %v2967_v20, %v2651_v15  ;;  %4237 = vrot.lane.b32.xlu1 %v4080_v48, %s5993_s13 }
 0x3ae   :  { %v4149_v29 = vpop.f32.mrb[54].mxu1  ;;  %v4220_v54 = vpop.f32.mrb[54].mxu0 }
 0x3af   :  { %4239 = vrot.lane.b32.xlu0 %v4149_v29, %s5993_s13  ;;  %v4151_v19 = vpop.f32.mrb[55].mxu1  ;;  %v5309_v55 = vpop.f32.mrb[55].mxu0 }
 0x3b0   :  { %4241 = vrot.lane.b32.xlu1 %v4151_v19, %s5993_s13 }
 0x3b1   :  { %v3280_v5 = vpop.permute.xlu1 %3279 }
 0x3b2   :  { %v3282_v23 = vpop.permute.xlu0 %3281 }
 0x3b3   :  { %v3293_v2 = vsel %vm130_vm3, %v3280_v5, %v3282_v23  ;;  %4243 = vrot.lane.b32.xlu0 %v4220_v54, %s5993_s13 }
 0x3b4   :  { %v3308_v4 = vadd.f32 %v3293_v2, %v2977_v22 }
 0x3b5   :  { %v3284_v3 = vpop.permute.xlu1 %3283 }
 0x3b6   :  { %v3294_v1 = vsel %vm130_vm3, %v3282_v23, %v3284_v3  ;;  %v3286_v26 = vpop.permute.xlu0 %3285  ;;  %v7548_v32 = vadd.f32 %v7501_v45, %v3308_v4 }
 0x3b7   :  { %v3309_v60 = vadd.f32 %v3294_v1, %v2978_v35  ;;  %v3295_v10 = vsel %vm130_vm3, %v3284_v3, %v3286_v26 }
 0x3b8   :  { %v3310_v63 = vadd.f32 %v3295_v10, %v2979_v57 }
 0x3b9   :  { %v7552_v56 = vadd.f32 %v7499_v53, %v3309_v60 }
 0x3ba   :  { %v7555_v46 = vadd.f32 %v7503_v40, %v3310_v63 }
 0x3be   :  { %v4338_v42 = vpop.f32.mrb[56].mxu1  ;;  %v4409_v17 = vpop.f32.mrb[56].mxu0 }
 0x3bf   :  { %4589 = vrot.lane.b32.xlu1 %v4338_v42, %s5997_s17  ;;  %4562 = vrot.lane.b32.xlu0 %v4338_v42, %s5994_s14  ;;  %v4340_v51 = vpop.f32.mrb[57].mxu1  ;;  %v4411_v59 = vpop.f32.mrb[57].mxu0 }
 0x3c1   :  { %v3271_v45 = vpop.permute.xlu0 %3270  ;;  %v3288_v16 = vpop.permute.xlu1 %3287 }
 0x3c2   :  { %v3306_v21 = vsel %vm130_vm3, %v3271_v45, %v3280_v5  ;;  %v3296_v28 = vsel %vm130_vm3, %v3286_v26, %v3288_v16 }
 0x3c3   :  { %v3307_v52 = vadd.f32 %v3306_v21, %v2976_v43  ;;  %v3311_v53 = vadd.f32 %v3296_v28, %v2980_v12  ;;  %4566 = vrot.lane.b32.xlu0 %v4409_v17, %s5994_s14  ;;  %4564 = vrot.lane.b32.xlu1 %v4340_v51, %s5994_s14 }
 0x3c5   :  { %v3292_v40 = vpop.permute.xlu1 %3291  ;;  %v3290_v30 = vpop.permute.xlu0 %3289  ;;  %v3600_v15 = vadd.f32 %v7497_v24, %v3307_v52  ;;  %v7565_v44 = vadd.f32 %v7509_v18, %v3311_v53 }
 0x3c6   :  { %v3297_v7 = vsel %vm130_vm3, %v3288_v16, %v3290_v30  ;;  %v3298_v13 = vsel %vm130_vm3, %v3290_v30, %v3292_v40 }
 0x3c7   :  { %v3312_v39 = vadd.f32 %v3297_v7, %v2981_v36  ;;  %v3313_v11 = vadd.f32 %v3298_v13, %v2982_v38  ;;  %4568 = vrot.lane.b32.xlu1 %v4411_v59, %s5994_s14 }
 0x3c9   :  { %v7571_v9 = vadd.f32 %v7511_v25, %v3313_v11  ;;  %v7574_v31 = vadd.f32 %v7513_v34, %v3312_v39 }
 0x3ce   :  { %v4480_v22 = vpop.f32.mrb[58].mxu1  ;;  %v4551_v61 = vpop.f32.mrb[58].mxu0 }
 0x3cf   :  { %4570 = vrot.lane.b32.xlu0 %v4480_v22, %s5994_s14  ;;  %v4482_v24 = vpop.f32.mrb[59].mxu1  ;;  %v5328_v18 = vpop.f32.mrb[59].mxu0 }
 0x3d0   :  { %4572 = vrot.lane.b32.xlu1 %v4482_v24, %s5994_s14 }
 0x3d3   :  { %4574 = vrot.lane.b32.xlu0 %v4551_v61, %s5994_s14 }
 0x3de   :  { %v4669_v50 = vpop.f32.mrb[60].mxu1  ;;  %v4740_v0 = vpop.f32.mrb[60].mxu0 }
 0x3df   :  { %4893 = vrot.lane.b32.xlu0 %v4669_v50, %s5998_s18  ;;  %v4671_v35 = vpop.f32.mrb[61].mxu1  ;;  %v4742_v25 = vpop.f32.mrb[61].mxu0 }
 0x3e0   :  { %4895 = vrot.lane.b32.xlu1 %v4671_v35, %s5998_s18 }
 0x3e3   :  { %4897 = vrot.lane.b32.xlu0 %v4740_v0, %s5998_s18 }
 0x3e4   :  { %4899 = vrot.lane.b32.xlu1 %v4742_v25, %s5998_s18 }
 0x3ee   :  { %v4811_v34 = vpop.f32.mrb[62].mxu1  ;;  %v4882_v27 = vpop.f32.mrb[62].mxu0 }
 0x3ef   :  { %4901 = vrot.lane.b32.xlu0 %v4811_v34, %s5998_s18  ;;  %v4813_v57 = vpop.f32.mrb[63].mxu1  ;;  %v5347_v8 = vpop.f32.mrb[63].mxu0 }
 0x3f0   :  { %4903 = vrot.lane.b32.xlu1 %v4813_v57, %s5998_s18 }
 0x3f1   :  { %v3901_v14 = vpop.permute.xlu0 %3900  ;;  %v3928_v6 = vpop.permute.xlu1 %3927 }
 0x3f3   :  { %4905 = vrot.lane.b32.xlu0 %v4882_v27, %s5998_s18 }
 0x3f4   :  { %4920 = vrot.lane.b32.xlu1 %v4669_v50, %s5999_s19 }
 0x3f5   :  { %v3905_v48 = vpop.permute.xlu0 %3904  ;;  %v3903_v37 = vpop.permute.xlu1 %3902 }
 0x3f6   :  { %v3914_v3 = vsel %vm153_vm4, %v3901_v14, %v3903_v37  ;;  %v3915_v1 = vsel %vm153_vm4, %v3903_v37, %v3905_v48 }
 0x3f7   :  { %v3931_v63 = vadd.f32 %v3914_v3, %v3600_v15  ;;  %v3932_v42 = vadd.f32 %v3915_v1, %v7548_v32 }
 0x3f9   :  { %v3907_v58 = vpop.permute.xlu1 %3906 }
 0x3fa   :  { %v3916_v32 = vsel %vm153_vm4, %v3905_v48, %v3907_v58 }
 0x3fb   :  { %v3933_v61 = vadd.f32 %v3916_v32, %v7552_v56 }
 0x401   :  { %v3909_v33 = vpop.permute.xlu0 %3908 }
 0x402   :  { %v3911_v43 = vpop.permute.xlu1 %3910  ;;  %v3917_v39 = vsel %vm153_vm4, %v3907_v58, %v3909_v33 }
 0x403   :  { %v3934_v24 = vadd.f32 %v3917_v39, %v7555_v46  ;;  %v3918_v18 = vsel %vm153_vm4, %v3909_v33, %v3911_v43 }
 0x404   :  { %v3935_v14 = vadd.f32 %v3918_v18, %v7565_v44 }
 0x405   :  { %v3913_v47 = vpop.permute.xlu0 %3912 }
 0x406   :  { %v3919_v50 = vsel %vm153_vm4, %v3911_v43, %v3913_v47  ;;  %v3930_v35 = vsel %vm164_vm7, %v3913_v47, %v3928_v6 }
 0x407   :  { %v3936_v56 = vadd.f32 %v3919_v50, %v7574_v31  ;;  %v3937_v37 = vadd.f32 %v3930_v35, %v7571_v9 }
 0x411   :  { %v4232_v12 = vpop.permute.xlu0 %4231  ;;  %v4259_v41 = vpop.permute.xlu1 %4258 }
 0x415   :  { %v4236_v49 = vpop.permute.xlu0 %4235  ;;  %v4234_v62 = vpop.permute.xlu1 %4233 }
 0x416   :  { %v4245_v60 = vsel %vm180_vm5, %v4232_v12, %v4234_v62  ;;  %v4246_v10 = vsel %vm180_vm5, %v4234_v62, %v4236_v49 }
 0x417   :  { %v4262_v16 = vadd.f32 %v4245_v60, %v3931_v63  ;;  %v4263_v21 = vadd.f32 %v4246_v10, %v3932_v42 }
 0x419   :  { %v4238_v36 = vpop.permute.xlu1 %4237 }
 0x41a   :  { %v4247_v11 = vsel %vm180_vm5, %v4236_v49, %v4238_v36 }
 0x41b   :  { %v4264_v27 = vadd.f32 %v4247_v11, %v3933_v61 }
 0x421   :  { %v4240_v20 = vpop.permute.xlu0 %4239 }
 0x422   :  { %v4242_v29 = vpop.permute.xlu1 %4241  ;;  %v4248_v22 = vsel %vm180_vm5, %v4238_v36, %v4240_v20 }
 0x423   :  { %v4265_v57 = vadd.f32 %v4248_v22, %v3934_v24  ;;  %v4249_v8 = vsel %vm180_vm5, %v4240_v20, %v4242_v29 }
 0x424   :  { %v4266_v43 = vadd.f32 %v4249_v8, %v3935_v14 }
 0x425   :  { %v4244_v38 = vpop.permute.xlu0 %4243 }
 0x426   :  { %v4250_v46 = vsel %vm180_vm5, %v4242_v29, %v4244_v38  ;;  %v4261_v6 = vsel %vm191_vm8, %v4244_v38, %v4259_v41 }
 0x427   :  { %v4267_v31 = vadd.f32 %v4250_v46, %v3936_v56 }
 0x431   :  { %v4563_v54 = vpop.permute.xlu0 %4562  ;;  %v4590_v19 = vpop.permute.xlu1 %4589 }
 0x435   :  { %v4567_v55 = vpop.permute.xlu0 %4566  ;;  %v4565_v5 = vpop.permute.xlu1 %4564 }
 0x436   :  { %v4576_v51 = vsel %vm207_vm6, %v4563_v54, %v4565_v5  ;;  %v4577_v59 = vsel %vm207_vm6, %v4565_v5, %v4567_v55  ;;  %v4268_v54 = vadd.f32 %v4261_v6, %v3937_v37 }
 0x437   :  { %v4593_v52 = vadd.f32 %v4576_v51, %v4262_v16  ;;  %v4594_v53 = vadd.f32 %v4577_v59, %v4263_v21 }
 0x439   :  { %v4569_v2 = vpop.permute.xlu1 %4568 }
 0x43a   :  { %v4578_v25 = vsel %vm207_vm6, %v4567_v55, %v4569_v2 }
 0x43b   :  { %v4595_v33 = vadd.f32 %v4578_v25, %v4264_v27 }
 0x441   :  { %v4571_v23 = vpop.permute.xlu0 %4570 }
 0x442   :  { %v4573_v26 = vpop.permute.xlu1 %4572  ;;  %v4579_v34 = vsel %vm207_vm6, %v4569_v2, %v4571_v23 }
 0x443   :  { %v4596_v58 = vadd.f32 %v4579_v34, %v4265_v57  ;;  %v4580_v12 = vsel %vm207_vm6, %v4571_v23, %v4573_v26 }
 0x444   :  { %v4597_v41 = vadd.f32 %v4580_v12, %v4266_v43 }
 0x445   :  { %v4575_v4 = vpop.permute.xlu0 %4574 }
 0x446   :  { %v4581_v49 = vsel %vm207_vm6, %v4573_v26, %v4575_v4  ;;  %v4592_v20 = vsel %vm218_vm9, %v4575_v4, %v4590_v19 }
 0x447   :  { %v4598_v38 = vadd.f32 %v4581_v49, %v4267_v31  ;;  %v4599_v2 = vadd.f32 %v4592_v20, %v4268_v54 }
 0x451   :  { %v4894_v17 = vpop.permute.xlu0 %4893 }
 0x452   :  { %v4896_v45 = vpop.permute.xlu1 %4895 }
 0x453   :  { %v4907_v28 = vsel %vm234_vm10, %v4894_v17, %v4896_v45 }
 0x454   :  { %v4924_v7 = vadd.f32 %v4907_v28, %v4593_v52 }
 0x455   :  { %v4898_v40 = vpop.permute.xlu0 %4897 }
 0x456   :  { %v4908_v30 = vsel %vm234_vm10, %v4896_v45, %v4898_v40  ;;  %v4900_v0 = vpop.permute.xlu1 %4899 }
 0x457   :  { %v4925_v13 = vadd.f32 %v4908_v30, %v4594_v53  ;;  %v4909_v48 = vsel %vm234_vm10, %v4898_v40, %v4900_v0 }
 0x458   :  { %v4926_v36 = vadd.f32 %v4909_v48, %v4595_v33 }
 0x459   :  { %v4937_v15 = vcombine.low %v4924_v7, %v4925_v13 }
 0x45b   :  { %4943 = vst [vmem:[#allocation2] sm:$0x77] %v4937_v15 }
 0x461   :  { %v4902_v47 = vpop.permute.xlu0 %4901 }
 0x462   :  { %v4910_v44 = vsel %vm234_vm10, %v4900_v0, %v4902_v47  ;;  %v4904_v62 = vpop.permute.xlu1 %4903 }
 0x463   :  { %v4927_v29 = vadd.f32 %v4910_v44, %v4596_v58  ;;  %v4911_v9 = vsel %vm234_vm10, %v4902_v47, %v4904_v62 }
 0x464   :  { %v4928_v1 = vadd.f32 %v4911_v9, %v4597_v41 }
 0x465   :  { %v4938_v55 = vcombine.low %v4926_v36, %v4927_v29  ;;  %v4906_v5 = vpop.permute.xlu0 %4905 }
 0x466   :  { %v4912_v23 = vsel %vm234_vm10, %v4904_v62, %v4906_v5  ;;  %v4921_v3 = vpop.permute.xlu1 %4920 }
 0x467   :  { %4944 = vst [vmem:[#allocation2 + $0x8] sm:$0x77] %v4938_v55  ;;  %v4929_v26 = vadd.f32 %v4912_v23, %v4598_v38  ;;  %v4923_v19 = vsel %vm245_vm11, %v4906_v5, %v4921_v3 }
 0x468   :  { %v4930_v4 = vadd.f32 %v4923_v19, %v4599_v2 }
 0x469   :  { %v4939_v60 = vcombine.low %v4928_v1, %v4929_v26 }
 0x46a   :  { %4947 = vst.msk [vmem:[#allocation2 + $0x18] sm:$0x7] %vm4946_vm0, %v4930_v4 }
 0x46b   :  { %4945 = vst [vmem:[#allocation2 + $0x10] sm:$0x77] %v4939_v60 }
 0x46c   :  { %5971 = shalt.err (!%p5968_p4)
}
 0x46d   :  { %s5972_s10 = scalar_lea.hbm %s7639_s6, 448 }
 0x46e   :  { %p5973_p5 = scmp.ne.s32.totalorder %s7639_s6, %s5972_s10  ;;  %p5976_p6 = scmp.lt.u32.totalorder %s5972_s10, %s7639_s6 }
 0x470   :  { %p5978_p7 = pnand %p5976_p6, %p5973_p5 }
 0x472   :  { %5981 = shalt.err (!%p5978_p7)
}
 0x473   :  { %4957 = dma.vmem_to_hbm [thread:$0]  %s4955_s7, 448, %s7639_s6, [#allocation3]  }
 0x474   :  { %5982 = dma.done.wait [#allocation3], 448  }
 0x475   :  { %5983 = vsyncadd [#allocation3], 4294966848 }
 0x476   :  { %4961 = vsyncpa [#allocation3], 1 }

</bundles_post_ra>
